<compile_context>
chip_gen: v7x
topology: tpu7x:2x2x1
jax: 0.10.0
libtpu: 0.0.40
codegen_flags: <defaults>
</compile_context>

<pallas_src>
import jax
import jax.numpy as jnp
from jax import lax
from jax.experimental import pallas as pl
from jax.experimental.pallas import tpu as pltpu


def _round_up(x, m):
    return (x + m - 1) // m * m


def _pick_tile(total, target, align):
    """Largest multiple of `align` <= target that divides `total` (total % align == 0)."""
    t = max(align, min(total, (target // align) * align))
    while total % t:
        t -= align
    return t


def _vmem_limit(resident_bytes):
    """Scoped-VMEM limit: actual residency + headroom, capped at physical VMEM."""
    want = int(resident_bytes) + (8 << 20)
    try:
        cap = int(pltpu.get_tpu_info().vmem_capacity_bytes) * 7 // 8
    except Exception:  # pragma: no cover - conservative fallback (v7x-safe)
        cap = 48 << 20
    return max(32 << 20, min(want, cap))


# ----------------------------------------------------------------------------
# Kernel 1: input-gate matmuls + serial GRU recurrence.
# ----------------------------------------------------------------------------
def gru_recurrence_kernel(x_ref, h0_ref,
                          wir_ref, wiz_ref, win_ref,
                          whr_ref, whz_ref, whn_ref,
                          bir_ref, biz_ref, bin_ref, bhn_ref,
                          hs_ref, hid_ref,
                          gir_sc, giz_sc, gin_sc):
    Bp, H = h0_ref.shape
    T = hs_ref.shape[0] // Bp

    # phase 1: input gates for ALL timesteps; one lane-aligned slab per gate.
    x = x_ref[...]
    gir_sc[...] = (jnp.dot(x, wir_ref[...], preferred_element_type=jnp.float32)
                   + bir_ref[...])
    giz_sc[...] = (jnp.dot(x, wiz_ref[...], preferred_element_type=jnp.float32)
                   + biz_ref[...])
    gin_sc[...] = (jnp.dot(x, win_ref[...], preferred_element_type=jnp.float32)
                   + bin_ref[...])

    whr = whr_ref[...]
    whz = whz_ref[...]
    whn = whn_ref[...]
    b_hn = bhn_ref[...]

    # phase 2: serial recurrence; only h @ W_h{r,z,n} + gate math per step.
    def step(t, h):
        row = pl.multiple_of(t * Bp, 8)           # sublane-aligned offset
        hc = h.astype(whr.dtype)
        gh_r = jnp.dot(hc, whr, preferred_element_type=jnp.float32)
        gh_z = jnp.dot(hc, whz, preferred_element_type=jnp.float32)
        gh_n = jnp.dot(hc, whn, preferred_element_type=jnp.float32)
        r = jax.nn.sigmoid(gir_sc[pl.ds(row, Bp), :] + gh_r)
        z = jax.nn.sigmoid(giz_sc[pl.ds(row, Bp), :] + gh_z)
        n = jnp.tanh(gin_sc[pl.ds(row, Bp), :] + r * (gh_n + b_hn))
        h_new = (1.0 - z) * n + z * h
        hs_ref[pl.ds(row, Bp), :] = h_new.astype(hs_ref.dtype)
        return h_new

    h_last = lax.fori_loop(0, T, step, h0_ref[...].astype(jnp.float32),
                           unroll=min(T, 8))       # bounded unroll
    hid_ref[...] = h_last.astype(hid_ref.dtype)


# ----------------------------------------------------------------------------
# Kernel 2a: tiled projection, online log-sum-exp over vocab tiles.
# ----------------------------------------------------------------------------
def proj_logsumexp_kernel(hs_ref, w_ref, b_ref, logz_ref, m_sc, l_sc):
    j = pl.program_id(1)

    @pl.when(j == 0)
    def _():
        m_sc[...] = jnp.full(m_sc.shape, -jnp.inf, dtype=m_sc.dtype)
        l_sc[...] = jnp.zeros(l_sc.shape, dtype=l_sc.dtype)

    logits = (jnp.dot(hs_ref[...], w_ref[...],
                      preferred_element_type=jnp.float32) + b_ref[...])
    m_prev = m_sc[...]
    m_new = jnp.maximum(m_prev, jnp.max(logits, axis=-1, keepdims=True))
    l_sc[...] = (l_sc[...] * jnp.exp(m_prev - m_new)
                 + jnp.sum(jnp.exp(logits - m_new), axis=-1, keepdims=True))
    m_sc[...] = m_new

    @pl.when(j == pl.num_programs(1) - 1)
    def _():
        logz_ref[...] = m_sc[...] + jnp.log(l_sc[...])


# ----------------------------------------------------------------------------
# Kernel 2b: tiled projection, write log-probs (logits - logZ).
# ----------------------------------------------------------------------------
def proj_logprob_kernel(hs_ref, w_ref, b_ref, logz_ref, out_ref):
    logits = (jnp.dot(hs_ref[...], w_ref[...],
                      preferred_element_type=jnp.float32) + b_ref[...])
    out_ref[...] = (logits - logz_ref[...]).astype(out_ref.dtype)


# ----------------------------------------------------------------------------
# Wrapper
# ----------------------------------------------------------------------------
def seq2seq_decoder_forward(x_tokens, prev_hidden, params, *,
                            mxu_dtype=jnp.float32,
                            row_tile=256, vocab_tile=2048):
    """x_tokens: (B, T) int32, prev_hidden: (1, B, H) f32 -> (log_probs, hidden).

    mxu_dtype=jnp.bfloat16 casts MXU operands (x, weights, hs slab) to bf16 for
    v6e/v7x (halves the hs HBM traffic); gate math and softmax stay in f32.
    """
    emb_table = params["embedding"]                    # (V, H)
    H = emb_table.shape[1]
    V = params["w_out"].shape[1]
    B, T = x_tokens.shape

    Bp = _round_up(B, 8)        # sublane-aligned batch (grow B to amortize the serial loop)
    Vp = _round_up(V, 128)      # lane-dense vocab
    NEG = -1e30
    isz = jnp.dtype(mxu_dtype).itemsize
    vmem = pltpu.MemorySpace.VMEM

    # Embedding gather + transpose(0, 1): (B, T, H) -> (T, B, H)  [JAX glue],
    # padded to (T, Bp, H) and flattened time-major to (T*Bp, H).
    emb = jnp.transpose(emb_table[x_tokens], (1, 0, 2)).astype(jnp.float32)
    emb = jnp.pad(emb, ((0, 0), (0, Bp - B), (0, 0)))
    x_all = emb.reshape(T * Bp, H).astype(mxu_dtype)

    h0 = jnp.pad(prev_hidden[0], ((0, Bp - B), (0, 0))).astype(jnp.float32)

    # Split per-gate weight/bias layout (lane-aligned gate slabs, no 3H slicing).
    w_ih, w_hh = params["w_ih_t"], params["w_hh_t"]                 # (H, 3H)
    b_ih, b_hh = params["b_ih"], params["b_hh"]                     # (1, 3H)
    cast = lambda a: a.astype(mxu_dtype)
    w_ir, w_iz, w_in_ = w_ih[:, :H], w_ih[:, H:2 * H], w_ih[:, 2 * H:]
    w_hr, w_hz, w_hn = w_hh[:, :H], w_hh[:, H:2 * H], w_hh[:, 2 * H:]
    # Fold hidden biases of r/z into the input gates; n-gate hidden bias stays
    # inside the r * (.) term (PyTorch GRU formulation).
    b_ir = (b_ih[:, :H] + b_hh[:, :H]).astype(jnp.float32)
    b_iz = (b_ih[:, H:2 * H] + b_hh[:, H:2 * H]).astype(jnp.float32)
    b_in_ = b_ih[:, 2 * H:].astype(jnp.float32)
    b_hn = b_hh[:, 2 * H:].astype(jnp.float32)

    rec_inputs = (x_all, h0,
                  cast(w_ir), cast(w_iz), cast(w_in_),
                  cast(w_hr), cast(w_hz), cast(w_hn),
                  b_ir, b_iz, b_in_, b_hn)

    rec_bytes = (sum(int(a.size) * a.dtype.itemsize for a in rec_inputs)
                 + T * Bp * H * isz          # hs output
                 + Bp * H * 4                # final hidden output
                 + 3 * T * Bp * H * 4)       # gi scratches

    # --- Kernel 1: recurrence (single grid point) ----------------------------
    hs, hid = pl.pallas_call(
        gru_recurrence_kernel,
        out_shape=(
            jax.ShapeDtypeStruct((T * Bp, H), mxu_dtype),   # hidden-state slab
            jax.ShapeDtypeStruct((Bp, H), jnp.float32),     # final hidden
        ),
        in_specs=[pl.BlockSpec(memory_space=vmem)] * len(rec_inputs),
        out_specs=(pl.BlockSpec(memory_space=vmem),
                   pl.BlockSpec(memory_space=vmem)),
        scratch_shapes=[pltpu.VMEM((T * Bp, H), jnp.float32)] * 3,
        compiler_params=pltpu.CompilerParams(
            vmem_limit_bytes=_vmem_limit(rec_bytes)),
    )(*rec_inputs)

    # --- Kernel 2: tiled projection + log_softmax ----------------------------
    w_out_p = jnp.pad(params["w_out"],
                      ((0, 0), (0, Vp - V))).astype(mxu_dtype)      # (H, Vp)
    b_out_p = jnp.pad(params["b_out"], ((0, 0), (0, Vp - V)),
                      constant_values=NEG).astype(jnp.float32)      # (1, Vp)

    R = T * Bp
    tm = _pick_tile(R, row_tile, 8)
    tv = _pick_tile(Vp, vocab_tile, 128)
    grid = (R // tm, Vp // tv)

    tile_common = tm * H * isz + H * tv * isz + tv * 4 + tm * 4
    projA_bytes = 2 * tile_common + 2 * tm * 4
    projB_bytes = 2 * (tile_common + tm * tv * 4)

    logz = pl.pallas_call(
        proj_logsumexp_kernel,
        out_shape=jax.ShapeDtypeStruct((R, 1), jnp.float32),
        grid=grid,
        in_specs=[pl.BlockSpec((tm, H), lambda i, j: (i, 0)),
                  pl.BlockSpec((H, tv), lambda i, j: (0, j)),
                  pl.BlockSpec((1, tv), lambda i, j: (0, j))],
        out_specs=pl.BlockSpec((tm, 1), lambda i, j: (i, 0)),
        scratch_shapes=[pltpu.VMEM((tm, 1), jnp.float32),
                        pltpu.VMEM((tm, 1), jnp.float32)],
        compiler_params=pltpu.CompilerParams(
            dimension_semantics=("parallel", "arbitrary"),
            vmem_limit_bytes=_vmem_limit(projA_bytes)),
    )(hs, w_out_p, b_out_p)

    out2d = pl.pallas_call(
        proj_logprob_kernel,
        out_shape=jax.ShapeDtypeStruct((R, Vp), jnp.float32),
        grid=grid,
        in_specs=[pl.BlockSpec((tm, H), lambda i, j: (i, 0)),
                  pl.BlockSpec((H, tv), lambda i, j: (0, j)),
                  pl.BlockSpec((1, tv), lambda i, j: (0, j)),
                  pl.BlockSpec((tm, 1), lambda i, j: (i, 0))],
        out_specs=pl.BlockSpec((tm, tv), lambda i, j: (i, j)),
        compiler_params=pltpu.CompilerParams(
            dimension_semantics=("parallel", "parallel"),
            vmem_limit_bytes=_vmem_limit(projB_bytes)),
    )(hs, w_out_p, b_out_p, logz)

    out = out2d.reshape(T, Bp, Vp)[:, :B, :V]
    hidden = hid[None, :B, :]
    return out, hidden


def reference_forward(x_tokens, prev_hidden, params):
    """Pure-JAX reference of the PyTorch forward (numeric sanity check)."""
    emb = params["embedding"][x_tokens]                       # (B, T, H)
    emb = jnp.transpose(emb, (1, 0, 2))                       # (T, B, H)
    H = params["embedding"].shape[1]

    def step(h, x_t):
        gi = x_t @ params["w_ih_t"] + params["b_ih"][0]
        gh = h @ params["w_hh_t"] + params["b_hh"][0]
        r = jax.nn.sigmoid(gi[:, :H] + gh[:, :H])
        z = jax.nn.sigmoid(gi[:, H:2 * H] + gh[:, H:2 * H])
        n = jnp.tanh(gi[:, 2 * H:] + r * gh[:, 2 * H:])
        h_new = (1.0 - z) * n + z * h
        return h_new, h_new

    h_last, hs = jax.lax.scan(step, prev_hidden[0], emb)
    logits = hs @ params["w_out"] + params["b_out"][0]
    out = jax.nn.log_softmax(logits, axis=2)
    return out, h_last[None]


if __name__ == "__main__":
    # Small shapes consistent with the module: vocab=64, hidden=data_dim=32.
    V, H = 64, 32        # output_size, hidden_size
    B, T = 2, 8          # batch, sequence length

    key = jax.random.PRNGKey(0)
    ks = jax.random.split(key, 8)
    params = {
        "embedding": jax.random.normal(ks[0], (V, H), jnp.float32) * 0.1,
        "w_ih_t":    jax.random.normal(ks[1], (H, 3 * H), jnp.float32) * 0.1,
        "w_hh_t":    jax.random.normal(ks[2], (H, 3 * H), jnp.float32) * 0.1,
        "b_ih":      jax.random.normal(ks[3], (1, 3 * H), jnp.float32) * 0.1,
        "b_hh":      jax.random.normal(ks[4], (1, 3 * H), jnp.float32) * 0.1,
        "w_out":     jax.random.normal(ks[5], (H, V), jnp.float32) * 0.1,
        "b_out":     jax.random.normal(ks[6], (1, V), jnp.float32) * 0.1,
    }

    x_tokens = jax.random.randint(ks[7], (B, T), 0, V, dtype=jnp.int32)
    prev_hidden = jnp.zeros((1, B, H), jnp.float32)   # initHidden(batch)

    out, hidden = seq2seq_decoder_forward(x_tokens, prev_hidden, params)
    jax.block_until_ready((out, hidden))

    out_ref, hid_ref = reference_forward(x_tokens, prev_hidden, params)
    assert out.shape == (T, B, V) and hidden.shape == (1, B, H)
    assert jnp.allclose(out, out_ref, atol=1e-4, rtol=1e-4)
    assert jnp.allclose(hidden, hid_ref, atol=1e-4, rtol=1e-4)

    print("KERNEL_OK")
</pallas_src>

<mosaic_0001>
module attributes {stable_mosaic.version = 11 : i64} {
  func.func @gru_recurrence_kernel(%arg0: memref<64x32xf32, #tpu.memory_space<vmem>>, %arg1: memref<8x32xf32, #tpu.memory_space<vmem>>, %arg2: memref<32x32xf32, #tpu.memory_space<vmem>>, %arg3: memref<32x32xf32, #tpu.memory_space<vmem>>, %arg4: memref<32x32xf32, #tpu.memory_space<vmem>>, %arg5: memref<32x32xf32, #tpu.memory_space<vmem>>, %arg6: memref<32x32xf32, #tpu.memory_space<vmem>>, %arg7: memref<32x32xf32, #tpu.memory_space<vmem>>, %arg8: memref<1x32xf32, #tpu.memory_space<vmem>>, %arg9: memref<1x32xf32, #tpu.memory_space<vmem>>, %arg10: memref<1x32xf32, #tpu.memory_space<vmem>>, %arg11: memref<1x32xf32, #tpu.memory_space<vmem>>, %arg12: memref<64x32xf32, #tpu.memory_space<vmem>>, %arg13: memref<8x32xf32, #tpu.memory_space<vmem>>, %arg14: memref<64x32xf32, #tpu.memory_space<vmem>>, %arg15: memref<64x32xf32, #tpu.memory_space<vmem>>, %arg16: memref<64x32xf32, #tpu.memory_space<vmem>>) attributes {dimension_semantics = [], scalar_prefetch = 0 : i64, scratch_operands = 3 : i64, tpu.core_type = #tpu.core_type<tc>} {
    %c0 = arith.constant 0 : index
    %c0_0 = arith.constant 0 : index
    %0 = vector.load %arg0[%c0, %c0_0] : memref<64x32xf32, #tpu.memory_space<vmem>>, vector<64x32xf32>
    %c0_1 = arith.constant 0 : index
    %c0_2 = arith.constant 0 : index
    %1 = vector.load %arg2[%c0_1, %c0_2] : memref<32x32xf32, #tpu.memory_space<vmem>>, vector<32x32xf32>
    %cst = arith.constant dense<0.000000e+00> : vector<64x32xf32>
    %2 = tpu.matmul %0, %1, %cst {dimension_numbers = #tpu.dot_dimension_numbers<[1], [0], [0], [1], [0, 0, 1, 1], [], []>} : vector<64x32xf32>, vector<32x32xf32>, vector<64x32xf32> -> vector<64x32xf32>
    %c0_3 = arith.constant 0 : index
    %c0_4 = arith.constant 0 : index
    %3 = vector.load %arg8[%c0_3, %c0_4] : memref<1x32xf32, #tpu.memory_space<vmem>>, vector<1x32xf32>
    %4 = vector.broadcast %3 : vector<1x32xf32> to vector<64x32xf32>
    %5 = arith.addf %2, %4 : vector<64x32xf32>
    %c0_5 = arith.constant 0 : index
    %c0_6 = arith.constant 0 : index
    %6 = vector.load %arg14[%c0_5, %c0_6] : memref<64x32xf32, #tpu.memory_space<vmem>>, vector<64x32xf32>
    tpu.vector_store %arg14[%c0_5, %c0_6], %5 {strides = array<i32>} : memref<64x32xf32, #tpu.memory_space<vmem>>, vector<64x32xf32>,
    %c0_7 = arith.constant 0 : index
    %c0_8 = arith.constant 0 : index
    %7 = vector.load %arg3[%c0_7, %c0_8] : memref<32x32xf32, #tpu.memory_space<vmem>>, vector<32x32xf32>
    %cst_9 = arith.constant dense<0.000000e+00> : vector<64x32xf32>
    %8 = tpu.matmul %0, %7, %cst_9 {dimension_numbers = #tpu.dot_dimension_numbers<[1], [0], [0], [1], [0, 0, 1, 1], [], []>} : vector<64x32xf32>, vector<32x32xf32>, vector<64x32xf32> -> vector<64x32xf32>
    %c0_10 = arith.constant 0 : index
    %c0_11 = arith.constant 0 : index
    %9 = vector.load %arg9[%c0_10, %c0_11] : memref<1x32xf32, #tpu.memory_space<vmem>>, vector<1x32xf32>
    %10 = vector.broadcast %9 : vector<1x32xf32> to vector<64x32xf32>
    %11 = arith.addf %8, %10 : vector<64x32xf32>
    %c0_12 = arith.constant 0 : index
    %c0_13 = arith.constant 0 : index
    %12 = vector.load %arg15[%c0_12, %c0_13] : memref<64x32xf32, #tpu.memory_space<vmem>>, vector<64x32xf32>
    tpu.vector_store %arg15[%c0_12, %c0_13], %11 {strides = array<i32>} : memref<64x32xf32, #tpu.memory_space<vmem>>, vector<64x32xf32>,
    %c0_14 = arith.constant 0 : index
    %c0_15 = arith.constant 0 : index
    %13 = vector.load %arg4[%c0_14, %c0_15] : memref<32x32xf32, #tpu.memory_space<vmem>>, vector<32x32xf32>
    %cst_16 = arith.constant dense<0.000000e+00> : vector<64x32xf32>
    %14 = tpu.matmul %0, %13, %cst_16 {dimension_numbers = #tpu.dot_dimension_numbers<[1], [0], [0], [1], [0, 0, 1, 1], [], []>} : vector<64x32xf32>, vector<32x32xf32>, vector<64x32xf32> -> vector<64x32xf32>
    %c0_17 = arith.constant 0 : index
    %c0_18 = arith.constant 0 : index
    %15 = vector.load %arg10[%c0_17, %c0_18] : memref<1x32xf32, #tpu.memory_space<vmem>>, vector<1x32xf32>
    %16 = vector.broadcast %15 : vector<1x32xf32> to vector<64x32xf32>
    %17 = arith.addf %14, %16 : vector<64x32xf32>
    %c0_19 = arith.constant 0 : index
    %c0_20 = arith.constant 0 : index
    %18 = vector.load %arg16[%c0_19, %c0_20] : memref<64x32xf32, #tpu.memory_space<vmem>>, vector<64x32xf32>
    tpu.vector_store %arg16[%c0_19, %c0_20], %17 {strides = array<i32>} : memref<64x32xf32, #tpu.memory_space<vmem>>, vector<64x32xf32>,
    %c0_21 = arith.constant 0 : index
    %c0_22 = arith.constant 0 : index
    %19 = vector.load %arg5[%c0_21, %c0_22] : memref<32x32xf32, #tpu.memory_space<vmem>>, vector<32x32xf32>
    %c0_23 = arith.constant 0 : index
    %c0_24 = arith.constant 0 : index
    %20 = vector.load %arg6[%c0_23, %c0_24] : memref<32x32xf32, #tpu.memory_space<vmem>>, vector<32x32xf32>
    %c0_25 = arith.constant 0 : index
    %c0_26 = arith.constant 0 : index
    %21 = vector.load %arg7[%c0_25, %c0_26] : memref<32x32xf32, #tpu.memory_space<vmem>>, vector<32x32xf32>
    %c0_27 = arith.constant 0 : index
    %c0_28 = arith.constant 0 : index
    %22 = vector.load %arg11[%c0_27, %c0_28] : memref<1x32xf32, #tpu.memory_space<vmem>>, vector<1x32xf32>
    %c0_29 = arith.constant 0 : index
    %c0_30 = arith.constant 0 : index
    %23 = vector.load %arg1[%c0_29, %c0_30] : memref<8x32xf32, #tpu.memory_space<vmem>>, vector<8x32xf32>
    %c0_i32 = arith.constant 0 : i32
    %c8_i32 = arith.constant 8 : i32
    %24 = arith.muli %c0_i32, %c8_i32 : i32
    %25 = tpu.assume_multiple %24, 8 : i32
    %cst_31 = arith.constant dense<0.000000e+00> : vector<8x32xf32>
    %26 = tpu.matmul %23, %19, %cst_31 {dimension_numbers = #tpu.dot_dimension_numbers<[1], [0], [0], [1], [0, 0, 1, 1], [], []>} : vector<8x32xf32>, vector<32x32xf32>, vector<8x32xf32> -> vector<8x32xf32>
    %cst_32 = arith.constant dense<0.000000e+00> : vector<8x32xf32>
    %27 = tpu.matmul %23, %20, %cst_32 {dimension_numbers = #tpu.dot_dimension_numbers<[1], [0], [0], [1], [0, 0, 1, 1], [], []>} : vector<8x32xf32>, vector<32x32xf32>, vector<8x32xf32> -> vector<8x32xf32>
    %cst_33 = arith.constant dense<0.000000e+00> : vector<8x32xf32>
    %28 = tpu.matmul %23, %21, %cst_33 {dimension_numbers = #tpu.dot_dimension_numbers<[1], [0], [0], [1], [0, 0, 1, 1], [], []>} : vector<8x32xf32>, vector<32x32xf32>, vector<8x32xf32> -> vector<8x32xf32>
    %29 = arith.index_cast %25 : i32 to index
    %c0_34 = arith.constant 0 : index
    %30 = vector.load %arg14[%29, %c0_34] : memref<64x32xf32, #tpu.memory_space<vmem>>, vector<8x32xf32>
    %31 = arith.addf %30, %26 : vector<8x32xf32>
    %32 = arith.negf %31 : vector<8x32xf32>
    %33 = math.exp %32 : vector<8x32xf32>
    %cst_35 = arith.constant 1.000000e+00 : f32
    %34 = vector.broadcast %cst_35 : f32 to vector<8x32xf32>
    %35 = arith.addf %34, %33 : vector<8x32xf32>
    %36 = arith.divf %34, %35 : vector<8x32xf32>
    %37 = arith.index_cast %25 : i32 to index
    %c0_36 = arith.constant 0 : index
    %38 = vector.load %arg15[%37, %c0_36] : memref<64x32xf32, #tpu.memory_space<vmem>>, vector<8x32xf32>
    %39 = arith.addf %38, %27 : vector<8x32xf32>
    %40 = arith.negf %39 : vector<8x32xf32>
    %41 = math.exp %40 : vector<8x32xf32>
    %cst_37 = arith.constant 1.000000e+00 : f32
    %42 = vector.broadcast %cst_37 : f32 to vector<8x32xf32>
    %43 = arith.addf %42, %41 : vector<8x32xf32>
    %44 = arith.divf %42, %43 : vector<8x32xf32>
    %45 = arith.index_cast %25 : i32 to index
    %c0_38 = arith.constant 0 : index
    %46 = vector.load %arg16[%45, %c0_38] : memref<64x32xf32, #tpu.memory_space<vmem>>, vector<8x32xf32>
    %47 = vector.broadcast %22 : vector<1x32xf32> to vector<8x32xf32>
    %48 = arith.addf %28, %47 : vector<8x32xf32>
    %49 = arith.mulf %36, %48 : vector<8x32xf32>
    %50 = arith.addf %46, %49 : vector<8x32xf32>
    %51 = math.tanh %50 : vector<8x32xf32>
    %cst_39 = arith.constant 1.000000e+00 : f32
    %52 = vector.broadcast %cst_39 : f32 to vector<8x32xf32>
    %53 = arith.subf %52, %44 : vector<8x32xf32>
    %54 = arith.mulf %53, %51 : vector<8x32xf32>
    %55 = arith.mulf %44, %23 : vector<8x32xf32>
    %56 = arith.addf %54, %55 : vector<8x32xf32>
    %57 = arith.index_cast %25 : i32 to index
    %c0_40 = arith.constant 0 : index
    %58 = vector.load %arg12[%57, %c0_40] : memref<64x32xf32, #tpu.memory_space<vmem>>, vector<8x32xf32>
    tpu.vector_store %arg12[%57, %c0_40], %56 {strides = array<i32>} : memref<64x32xf32, #tpu.memory_space<vmem>>, vector<8x32xf32>,
    %c1_i32 = arith.constant 1 : i32
    %c8_i32_41 = arith.constant 8 : i32
    %59 = arith.muli %c1_i32, %c8_i32_41 : i32
    %60 = tpu.assume_multiple %59, 8 : i32
    %cst_42 = arith.constant dense<0.000000e+00> : vector<8x32xf32>
    %61 = tpu.matmul %56, %19, %cst_42 {dimension_numbers = #tpu.dot_dimension_numbers<[1], [0], [0], [1], [0, 0, 1, 1], [], []>} : vector<8x32xf32>, vector<32x32xf32>, vector<8x32xf32> -> vector<8x32xf32>
    %cst_43 = arith.constant dense<0.000000e+00> : vector<8x32xf32>
    %62 = tpu.matmul %56, %20, %cst_43 {dimension_numbers = #tpu.dot_dimension_numbers<[1], [0], [0], [1], [0, 0, 1, 1], [], []>} : vector<8x32xf32>, vector<32x32xf32>, vector<8x32xf32> -> vector<8x32xf32>
    %cst_44 = arith.constant dense<0.000000e+00> : vector<8x32xf32>
    %63 = tpu.matmul %56, %21, %cst_44 {dimension_numbers = #tpu.dot_dimension_numbers<[1], [0], [0], [1], [0, 0, 1, 1], [], []>} : vector<8x32xf32>, vector<32x32xf32>, vector<8x32xf32> -> vector<8x32xf32>
    %64 = arith.index_cast %60 : i32 to index
    %c0_45 = arith.constant 0 : index
    %65 = vector.load %arg14[%64, %c0_45] : memref<64x32xf32, #tpu.memory_space<vmem>>, vector<8x32xf32>
    %66 = arith.addf %65, %61 : vector<8x32xf32>
    %67 = arith.negf %66 : vector<8x32xf32>
    %68 = math.exp %67 : vector<8x32xf32>
    %cst_46 = arith.constant 1.000000e+00 : f32
    %69 = vector.broadcast %cst_46 : f32 to vector<8x32xf32>
    %70 = arith.addf %69, %68 : vector<8x32xf32>
    %71 = arith.divf %69, %70 : vector<8x32xf32>
    %72 = arith.index_cast %60 : i32 to index
    %c0_47 = arith.constant 0 : index
    %73 = vector.load %arg15[%72, %c0_47] : memref<64x32xf32, #tpu.memory_space<vmem>>, vector<8x32xf32>
    %74 = arith.addf %73, %62 : vector<8x32xf32>
    %75 = arith.negf %74 : vector<8x32xf32>
    %76 = math.exp %75 : vector<8x32xf32>
    %cst_48 = arith.constant 1.000000e+00 : f32
    %77 = vector.broadcast %cst_48 : f32 to vector<8x32xf32>
    %78 = arith.addf %77, %76 : vector<8x32xf32>
    %79 = arith.divf %77, %78 : vector<8x32xf32>
    %80 = arith.index_cast %60 : i32 to index
    %c0_49 = arith.constant 0 : index
    %81 = vector.load %arg16[%80, %c0_49] : memref<64x32xf32, #tpu.memory_space<vmem>>, vector<8x32xf32>
    %82 = vector.broadcast %22 : vector<1x32xf32> to vector<8x32xf32>
    %83 = arith.addf %63, %82 : vector<8x32xf32>
    %84 = arith.mulf %71, %83 : vector<8x32xf32>
    %85 = arith.addf %81, %84 : vector<8x32xf32>
    %86 = math.tanh %85 : vector<8x32xf32>
    %cst_50 = arith.constant 1.000000e+00 : f32
    %87 = vector.broadcast %cst_50 : f32 to vector<8x32xf32>
    %88 = arith.subf %87, %79 : vector<8x32xf32>
    %89 = arith.mulf %88, %86 : vector<8x32xf32>
    %90 = arith.mulf %79, %56 : vector<8x32xf32>
    %91 = arith.addf %89, %90 : vector<8x32xf32>
    %92 = arith.index_cast %60 : i32 to index
    %c0_51 = arith.constant 0 : index
    %93 = vector.load %arg12[%92, %c0_51] : memref<64x32xf32, #tpu.memory_space<vmem>>, vector<8x32xf32>
    tpu.vector_store %arg12[%92, %c0_51], %91 {strides = array<i32>} : memref<64x32xf32, #tpu.memory_space<vmem>>, vector<8x32xf32>,
    %c2_i32 = arith.constant 2 : i32
    %c8_i32_52 = arith.constant 8 : i32
    %94 = arith.muli %c2_i32, %c8_i32_52 : i32
    %95 = tpu.assume_multiple %94, 8 : i32
    %cst_53 = arith.constant dense<0.000000e+00> : vector<8x32xf32>
    %96 = tpu.matmul %91, %19, %cst_53 {dimension_numbers = #tpu.dot_dimension_numbers<[1], [0], [0], [1], [0, 0, 1, 1], [], []>} : vector<8x32xf32>, vector<32x32xf32>, vector<8x32xf32> -> vector<8x32xf32>
    %cst_54 = arith.constant dense<0.000000e+00> : vector<8x32xf32>
    %97 = tpu.matmul %91, %20, %cst_54 {dimension_numbers = #tpu.dot_dimension_numbers<[1], [0], [0], [1], [0, 0, 1, 1], [], []>} : vector<8x32xf32>, vector<32x32xf32>, vector<8x32xf32> -> vector<8x32xf32>
    %cst_55 = arith.constant dense<0.000000e+00> : vector<8x32xf32>
    %98 = tpu.matmul %91, %21, %cst_55 {dimension_numbers = #tpu.dot_dimension_numbers<[1], [0], [0], [1], [0, 0, 1, 1], [], []>} : vector<8x32xf32>, vector<32x32xf32>, vector<8x32xf32> -> vector<8x32xf32>
    %99 = arith.index_cast %95 : i32 to index
    %c0_56 = arith.constant 0 : index
    %100 = vector.load %arg14[%99, %c0_56] : memref<64x32xf32, #tpu.memory_space<vmem>>, vector<8x32xf32>
    %101 = arith.addf %100, %96 : vector<8x32xf32>
    %102 = arith.negf %101 : vector<8x32xf32>
    %103 = math.exp %102 : vector<8x32xf32>
    %cst_57 = arith.constant 1.000000e+00 : f32
    %104 = vector.broadcast %cst_57 : f32 to vector<8x32xf32>
    %105 = arith.addf %104, %103 : vector<8x32xf32>
    %106 = arith.divf %104, %105 : vector<8x32xf32>
    %107 = arith.index_cast %95 : i32 to index
    %c0_58 = arith.constant 0 : index
    %108 = vector.load %arg15[%107, %c0_58] : memref<64x32xf32, #tpu.memory_space<vmem>>, vector<8x32xf32>
    %109 = arith.addf %108, %97 : vector<8x32xf32>
    %110 = arith.negf %109 : vector<8x32xf32>
    %111 = math.exp %110 : vector<8x32xf32>
    %cst_59 = arith.constant 1.000000e+00 : f32
    %112 = vector.broadcast %cst_59 : f32 to vector<8x32xf32>
    %113 = arith.addf %112, %111 : vector<8x32xf32>
    %114 = arith.divf %112, %113 : vector<8x32xf32>
    %115 = arith.index_cast %95 : i32 to index
    %c0_60 = arith.constant 0 : index
    %116 = vector.load %arg16[%115, %c0_60] : memref<64x32xf32, #tpu.memory_space<vmem>>, vector<8x32xf32>
    %117 = vector.broadcast %22 : vector<1x32xf32> to vector<8x32xf32>
    %118 = arith.addf %98, %117 : vector<8x32xf32>
    %119 = arith.mulf %106, %118 : vector<8x32xf32>
    %120 = arith.addf %116, %119 : vector<8x32xf32>
    %121 = math.tanh %120 : vector<8x32xf32>
    %cst_61 = arith.constant 1.000000e+00 : f32
    %122 = vector.broadcast %cst_61 : f32 to vector<8x32xf32>
    %123 = arith.subf %122, %114 : vector<8x32xf32>
    %124 = arith.mulf %123, %121 : vector<8x32xf32>
    %125 = arith.mulf %114, %91 : vector<8x32xf32>
    %126 = arith.addf %124, %125 : vector<8x32xf32>
    %127 = arith.index_cast %95 : i32 to index
    %c0_62 = arith.constant 0 : index
    %128 = vector.load %arg12[%127, %c0_62] : memref<64x32xf32, #tpu.memory_space<vmem>>, vector<8x32xf32>
    tpu.vector_store %arg12[%127, %c0_62], %126 {strides = array<i32>} : memref<64x32xf32, #tpu.memory_space<vmem>>, vector<8x32xf32>,
    %c3_i32 = arith.constant 3 : i32
    %c8_i32_63 = arith.constant 8 : i32
    %129 = arith.muli %c3_i32, %c8_i32_63 : i32
    %130 = tpu.assume_multiple %129, 8 : i32
    %cst_64 = arith.constant dense<0.000000e+00> : vector<8x32xf32>
    %131 = tpu.matmul %126, %19, %cst_64 {dimension_numbers = #tpu.dot_dimension_numbers<[1], [0], [0], [1], [0, 0, 1, 1], [], []>} : vector<8x32xf32>, vector<32x32xf32>, vector<8x32xf32> -> vector<8x32xf32>
    %cst_65 = arith.constant dense<0.000000e+00> : vector<8x32xf32>
    %132 = tpu.matmul %126, %20, %cst_65 {dimension_numbers = #tpu.dot_dimension_numbers<[1], [0], [0], [1], [0, 0, 1, 1], [], []>} : vector<8x32xf32>, vector<32x32xf32>, vector<8x32xf32> -> vector<8x32xf32>
    %cst_66 = arith.constant dense<0.000000e+00> : vector<8x32xf32>
    %133 = tpu.matmul %126, %21, %cst_66 {dimension_numbers = #tpu.dot_dimension_numbers<[1], [0], [0], [1], [0, 0, 1, 1], [], []>} : vector<8x32xf32>, vector<32x32xf32>, vector<8x32xf32> -> vector<8x32xf32>
    %134 = arith.index_cast %130 : i32 to index
    %c0_67 = arith.constant 0 : index
    %135 = vector.load %arg14[%134, %c0_67] : memref<64x32xf32, #tpu.memory_space<vmem>>, vector<8x32xf32>
    %136 = arith.addf %135, %131 : vector<8x32xf32>
    %137 = arith.negf %136 : vector<8x32xf32>
    %138 = math.exp %137 : vector<8x32xf32>
    %cst_68 = arith.constant 1.000000e+00 : f32
    %139 = vector.broadcast %cst_68 : f32 to vector<8x32xf32>
    %140 = arith.addf %139, %138 : vector<8x32xf32>
    %141 = arith.divf %139, %140 : vector<8x32xf32>
    %142 = arith.index_cast %130 : i32 to index
    %c0_69 = arith.constant 0 : index
    %143 = vector.load %arg15[%142, %c0_69] : memref<64x32xf32, #tpu.memory_space<vmem>>, vector<8x32xf32>
    %144 = arith.addf %143, %132 : vector<8x32xf32>
    %145 = arith.negf %144 : vector<8x32xf32>
    %146 = math.exp %145 : vector<8x32xf32>
    %cst_70 = arith.constant 1.000000e+00 : f32
    %147 = vector.broadcast %cst_70 : f32 to vector<8x32xf32>
    %148 = arith.addf %147, %146 : vector<8x32xf32>
    %149 = arith.divf %147, %148 : vector<8x32xf32>
    %150 = arith.index_cast %130 : i32 to index
    %c0_71 = arith.constant 0 : index
    %151 = vector.load %arg16[%150, %c0_71] : memref<64x32xf32, #tpu.memory_space<vmem>>, vector<8x32xf32>
    %152 = vector.broadcast %22 : vector<1x32xf32> to vector<8x32xf32>
    %153 = arith.addf %133, %152 : vector<8x32xf32>
    %154 = arith.mulf %141, %153 : vector<8x32xf32>
    %155 = arith.addf %151, %154 : vector<8x32xf32>
    %156 = math.tanh %155 : vector<8x32xf32>
    %cst_72 = arith.constant 1.000000e+00 : f32
    %157 = vector.broadcast %cst_72 : f32 to vector<8x32xf32>
    %158 = arith.subf %157, %149 : vector<8x32xf32>
    %159 = arith.mulf %158, %156 : vector<8x32xf32>
    %160 = arith.mulf %149, %126 : vector<8x32xf32>
    %161 = arith.addf %159, %160 : vector<8x32xf32>
    %162 = arith.index_cast %130 : i32 to index
    %c0_73 = arith.constant 0 : index
    %163 = vector.load %arg12[%162, %c0_73] : memref<64x32xf32, #tpu.memory_space<vmem>>, vector<8x32xf32>
    tpu.vector_store %arg12[%162, %c0_73], %161 {strides = array<i32>} : memref<64x32xf32, #tpu.memory_space<vmem>>, vector<8x32xf32>,
    %c4_i32 = arith.constant 4 : i32
    %c8_i32_74 = arith.constant 8 : i32
    %164 = arith.muli %c4_i32, %c8_i32_74 : i32
    %165 = tpu.assume_multiple %164, 8 : i32
    %cst_75 = arith.constant dense<0.000000e+00> : vector<8x32xf32>
    %166 = tpu.matmul %161, %19, %cst_75 {dimension_numbers = #tpu.dot_dimension_numbers<[1], [0], [0], [1], [0, 0, 1, 1], [], []>} : vector<8x32xf32>, vector<32x32xf32>, vector<8x32xf32> -> vector<8x32xf32>
    %cst_76 = arith.constant dense<0.000000e+00> : vector<8x32xf32>
    %167 = tpu.matmul %161, %20, %cst_76 {dimension_numbers = #tpu.dot_dimension_numbers<[1], [0], [0], [1], [0, 0, 1, 1], [], []>} : vector<8x32xf32>, vector<32x32xf32>, vector<8x32xf32> -> vector<8x32xf32>
    %cst_77 = arith.constant dense<0.000000e+00> : vector<8x32xf32>
    %168 = tpu.matmul %161, %21, %cst_77 {dimension_numbers = #tpu.dot_dimension_numbers<[1], [0], [0], [1], [0, 0, 1, 1], [], []>} : vector<8x32xf32>, vector<32x32xf32>, vector<8x32xf32> -> vector<8x32xf32>
    %169 = arith.index_cast %165 : i32 to index
    %c0_78 = arith.constant 0 : index
    %170 = vector.load %arg14[%169, %c0_78] : memref<64x32xf32, #tpu.memory_space<vmem>>, vector<8x32xf32>
    %171 = arith.addf %170, %166 : vector<8x32xf32>
    %172 = arith.negf %171 : vector<8x32xf32>
    %173 = math.exp %172 : vector<8x32xf32>
    %cst_79 = arith.constant 1.000000e+00 : f32
    %174 = vector.broadcast %cst_79 : f32 to vector<8x32xf32>
    %175 = arith.addf %174, %173 : vector<8x32xf32>
    %176 = arith.divf %174, %175 : vector<8x32xf32>
    %177 = arith.index_cast %165 : i32 to index
    %c0_80 = arith.constant 0 : index
    %178 = vector.load %arg15[%177, %c0_80] : memref<64x32xf32, #tpu.memory_space<vmem>>, vector<8x32xf32>
    %179 = arith.addf %178, %167 : vector<8x32xf32>
    %180 = arith.negf %179 : vector<8x32xf32>
    %181 = math.exp %180 : vector<8x32xf32>
    %cst_81 = arith.constant 1.000000e+00 : f32
    %182 = vector.broadcast %cst_81 : f32 to vector<8x32xf32>
    %183 = arith.addf %182, %181 : vector<8x32xf32>
    %184 = arith.divf %182, %183 : vector<8x32xf32>
    %185 = arith.index_cast %165 : i32 to index
    %c0_82 = arith.constant 0 : index
    %186 = vector.load %arg16[%185, %c0_82] : memref<64x32xf32, #tpu.memory_space<vmem>>, vector<8x32xf32>
    %187 = vector.broadcast %22 : vector<1x32xf32> to vector<8x32xf32>
    %188 = arith.addf %168, %187 : vector<8x32xf32>
    %189 = arith.mulf %176, %188 : vector<8x32xf32>
    %190 = arith.addf %186, %189 : vector<8x32xf32>
    %191 = math.tanh %190 : vector<8x32xf32>
    %cst_83 = arith.constant 1.000000e+00 : f32
    %192 = vector.broadcast %cst_83 : f32 to vector<8x32xf32>
    %193 = arith.subf %192, %184 : vector<8x32xf32>
    %194 = arith.mulf %193, %191 : vector<8x32xf32>
    %195 = arith.mulf %184, %161 : vector<8x32xf32>
    %196 = arith.addf %194, %195 : vector<8x32xf32>
    %197 = arith.index_cast %165 : i32 to index
    %c0_84 = arith.constant 0 : index
    %198 = vector.load %arg12[%197, %c0_84] : memref<64x32xf32, #tpu.memory_space<vmem>>, vector<8x32xf32>
    tpu.vector_store %arg12[%197, %c0_84], %196 {strides = array<i32>} : memref<64x32xf32, #tpu.memory_space<vmem>>, vector<8x32xf32>,
    %c5_i32 = arith.constant 5 : i32
    %c8_i32_85 = arith.constant 8 : i32
    %199 = arith.muli %c5_i32, %c8_i32_85 : i32
    %200 = tpu.assume_multiple %199, 8 : i32
    %cst_86 = arith.constant dense<0.000000e+00> : vector<8x32xf32>
    %201 = tpu.matmul %196, %19, %cst_86 {dimension_numbers = #tpu.dot_dimension_numbers<[1], [0], [0], [1], [0, 0, 1, 1], [], []>} : vector<8x32xf32>, vector<32x32xf32>, vector<8x32xf32> -> vector<8x32xf32>
    %cst_87 = arith.constant dense<0.000000e+00> : vector<8x32xf32>
    %202 = tpu.matmul %196, %20, %cst_87 {dimension_numbers = #tpu.dot_dimension_numbers<[1], [0], [0], [1], [0, 0, 1, 1], [], []>} : vector<8x32xf32>, vector<32x32xf32>, vector<8x32xf32> -> vector<8x32xf32>
    %cst_88 = arith.constant dense<0.000000e+00> : vector<8x32xf32>
    %203 = tpu.matmul %196, %21, %cst_88 {dimension_numbers = #tpu.dot_dimension_numbers<[1], [0], [0], [1], [0, 0, 1, 1], [], []>} : vector<8x32xf32>, vector<32x32xf32>, vector<8x32xf32> -> vector<8x32xf32>
    %204 = arith.index_cast %200 : i32 to index
    %c0_89 = arith.constant 0 : index
    %205 = vector.load %arg14[%204, %c0_89] : memref<64x32xf32, #tpu.memory_space<vmem>>, vector<8x32xf32>
    %206 = arith.addf %205, %201 : vector<8x32xf32>
    %207 = arith.negf %206 : vector<8x32xf32>
    %208 = math.exp %207 : vector<8x32xf32>
    %cst_90 = arith.constant 1.000000e+00 : f32
    %209 = vector.broadcast %cst_90 : f32 to vector<8x32xf32>
    %210 = arith.addf %209, %208 : vector<8x32xf32>
    %211 = arith.divf %209, %210 : vector<8x32xf32>
    %212 = arith.index_cast %200 : i32 to index
    %c0_91 = arith.constant 0 : index
    %213 = vector.load %arg15[%212, %c0_91] : memref<64x32xf32, #tpu.memory_space<vmem>>, vector<8x32xf32>
    %214 = arith.addf %213, %202 : vector<8x32xf32>
    %215 = arith.negf %214 : vector<8x32xf32>
    %216 = math.exp %215 : vector<8x32xf32>
    %cst_92 = arith.constant 1.000000e+00 : f32
    %217 = vector.broadcast %cst_92 : f32 to vector<8x32xf32>
    %218 = arith.addf %217, %216 : vector<8x32xf32>
    %219 = arith.divf %217, %218 : vector<8x32xf32>
    %220 = arith.index_cast %200 : i32 to index
    %c0_93 = arith.constant 0 : index
    %221 = vector.load %arg16[%220, %c0_93] : memref<64x32xf32, #tpu.memory_space<vmem>>, vector<8x32xf32>
    %222 = vector.broadcast %22 : vector<1x32xf32> to vector<8x32xf32>
    %223 = arith.addf %203, %222 : vector<8x32xf32>
    %224 = arith.mulf %211, %223 : vector<8x32xf32>
    %225 = arith.addf %221, %224 : vector<8x32xf32>
    %226 = math.tanh %225 : vector<8x32xf32>
    %cst_94 = arith.constant 1.000000e+00 : f32
    %227 = vector.broadcast %cst_94 : f32 to vector<8x32xf32>
    %228 = arith.subf %227, %219 : vector<8x32xf32>
    %229 = arith.mulf %228, %226 : vector<8x32xf32>
    %230 = arith.mulf %219, %196 : vector<8x32xf32>
    %231 = arith.addf %229, %230 : vector<8x32xf32>
    %232 = arith.index_cast %200 : i32 to index
    %c0_95 = arith.constant 0 : index
    %233 = vector.load %arg12[%232, %c0_95] : memref<64x32xf32, #tpu.memory_space<vmem>>, vector<8x32xf32>
    tpu.vector_store %arg12[%232, %c0_95], %231 {strides = array<i32>} : memref<64x32xf32, #tpu.memory_space<vmem>>, vector<8x32xf32>,
    %c6_i32 = arith.constant 6 : i32
    %c8_i32_96 = arith.constant 8 : i32
    %234 = arith.muli %c6_i32, %c8_i32_96 : i32
    %235 = tpu.assume_multiple %234, 8 : i32
    %cst_97 = arith.constant dense<0.000000e+00> : vector<8x32xf32>
    %236 = tpu.matmul %231, %19, %cst_97 {dimension_numbers = #tpu.dot_dimension_numbers<[1], [0], [0], [1], [0, 0, 1, 1], [], []>} : vector<8x32xf32>, vector<32x32xf32>, vector<8x32xf32> -> vector<8x32xf32>
    %cst_98 = arith.constant dense<0.000000e+00> : vector<8x32xf32>
    %237 = tpu.matmul %231, %20, %cst_98 {dimension_numbers = #tpu.dot_dimension_numbers<[1], [0], [0], [1], [0, 0, 1, 1], [], []>} : vector<8x32xf32>, vector<32x32xf32>, vector<8x32xf32> -> vector<8x32xf32>
    %cst_99 = arith.constant dense<0.000000e+00> : vector<8x32xf32>
    %238 = tpu.matmul %231, %21, %cst_99 {dimension_numbers = #tpu.dot_dimension_numbers<[1], [0], [0], [1], [0, 0, 1, 1], [], []>} : vector<8x32xf32>, vector<32x32xf32>, vector<8x32xf32> -> vector<8x32xf32>
    %239 = arith.index_cast %235 : i32 to index
    %c0_100 = arith.constant 0 : index
    %240 = vector.load %arg14[%239, %c0_100] : memref<64x32xf32, #tpu.memory_space<vmem>>, vector<8x32xf32>
    %241 = arith.addf %240, %236 : vector<8x32xf32>
    %242 = arith.negf %241 : vector<8x32xf32>
    %243 = math.exp %242 : vector<8x32xf32>
    %cst_101 = arith.constant 1.000000e+00 : f32
    %244 = vector.broadcast %cst_101 : f32 to vector<8x32xf32>
    %245 = arith.addf %244, %243 : vector<8x32xf32>
    %246 = arith.divf %244, %245 : vector<8x32xf32>
    %247 = arith.index_cast %235 : i32 to index
    %c0_102 = arith.constant 0 : index
    %248 = vector.load %arg15[%247, %c0_102] : memref<64x32xf32, #tpu.memory_space<vmem>>, vector<8x32xf32>
    %249 = arith.addf %248, %237 : vector<8x32xf32>
    %250 = arith.negf %249 : vector<8x32xf32>
    %251 = math.exp %250 : vector<8x32xf32>
    %cst_103 = arith.constant 1.000000e+00 : f32
    %252 = vector.broadcast %cst_103 : f32 to vector<8x32xf32>
    %253 = arith.addf %252, %251 : vector<8x32xf32>
    %254 = arith.divf %252, %253 : vector<8x32xf32>
    %255 = arith.index_cast %235 : i32 to index
    %c0_104 = arith.constant 0 : index
    %256 = vector.load %arg16[%255, %c0_104] : memref<64x32xf32, #tpu.memory_space<vmem>>, vector<8x32xf32>
    %257 = vector.broadcast %22 : vector<1x32xf32> to vector<8x32xf32>
    %258 = arith.addf %238, %257 : vector<8x32xf32>
    %259 = arith.mulf %246, %258 : vector<8x32xf32>
    %260 = arith.addf %256, %259 : vector<8x32xf32>
    %261 = math.tanh %260 : vector<8x32xf32>
    %cst_105 = arith.constant 1.000000e+00 : f32
    %262 = vector.broadcast %cst_105 : f32 to vector<8x32xf32>
    %263 = arith.subf %262, %254 : vector<8x32xf32>
    %264 = arith.mulf %263, %261 : vector<8x32xf32>
    %265 = arith.mulf %254, %231 : vector<8x32xf32>
    %266 = arith.addf %264, %265 : vector<8x32xf32>
    %267 = arith.index_cast %235 : i32 to index
    %c0_106 = arith.constant 0 : index
    %268 = vector.load %arg12[%267, %c0_106] : memref<64x32xf32, #tpu.memory_space<vmem>>, vector<8x32xf32>
    tpu.vector_store %arg12[%267, %c0_106], %266 {strides = array<i32>} : memref<64x32xf32, #tpu.memory_space<vmem>>, vector<8x32xf32>,
    %c7_i32 = arith.constant 7 : i32
    %c8_i32_107 = arith.constant 8 : i32
    %269 = arith.muli %c7_i32, %c8_i32_107 : i32
    %270 = tpu.assume_multiple %269, 8 : i32
    %cst_108 = arith.constant dense<0.000000e+00> : vector<8x32xf32>
    %271 = tpu.matmul %266, %19, %cst_108 {dimension_numbers = #tpu.dot_dimension_numbers<[1], [0], [0], [1], [0, 0, 1, 1], [], []>} : vector<8x32xf32>, vector<32x32xf32>, vector<8x32xf32> -> vector<8x32xf32>
    %cst_109 = arith.constant dense<0.000000e+00> : vector<8x32xf32>
    %272 = tpu.matmul %266, %20, %cst_109 {dimension_numbers = #tpu.dot_dimension_numbers<[1], [0], [0], [1], [0, 0, 1, 1], [], []>} : vector<8x32xf32>, vector<32x32xf32>, vector<8x32xf32> -> vector<8x32xf32>
    %cst_110 = arith.constant dense<0.000000e+00> : vector<8x32xf32>
    %273 = tpu.matmul %266, %21, %cst_110 {dimension_numbers = #tpu.dot_dimension_numbers<[1], [0], [0], [1], [0, 0, 1, 1], [], []>} : vector<8x32xf32>, vector<32x32xf32>, vector<8x32xf32> -> vector<8x32xf32>
    %274 = arith.index_cast %270 : i32 to index
    %c0_111 = arith.constant 0 : index
    %275 = vector.load %arg14[%274, %c0_111] : memref<64x32xf32, #tpu.memory_space<vmem>>, vector<8x32xf32>
    %276 = arith.addf %275, %271 : vector<8x32xf32>
    %277 = arith.negf %276 : vector<8x32xf32>
    %278 = math.exp %277 : vector<8x32xf32>
    %cst_112 = arith.constant 1.000000e+00 : f32
    %279 = vector.broadcast %cst_112 : f32 to vector<8x32xf32>
    %280 = arith.addf %279, %278 : vector<8x32xf32>
    %281 = arith.divf %279, %280 : vector<8x32xf32>
    %282 = arith.index_cast %270 : i32 to index
    %c0_113 = arith.constant 0 : index
    %283 = vector.load %arg15[%282, %c0_113] : memref<64x32xf32, #tpu.memory_space<vmem>>, vector<8x32xf32>
    %284 = arith.addf %283, %272 : vector<8x32xf32>
    %285 = arith.negf %284 : vector<8x32xf32>
    %286 = math.exp %285 : vector<8x32xf32>
    %cst_114 = arith.constant 1.000000e+00 : f32
    %287 = vector.broadcast %cst_114 : f32 to vector<8x32xf32>
    %288 = arith.addf %287, %286 : vector<8x32xf32>
    %289 = arith.divf %287, %288 : vector<8x32xf32>
    %290 = arith.index_cast %270 : i32 to index
    %c0_115 = arith.constant 0 : index
    %291 = vector.load %arg16[%290, %c0_115] : memref<64x32xf32, #tpu.memory_space<vmem>>, vector<8x32xf32>
    %292 = vector.broadcast %22 : vector<1x32xf32> to vector<8x32xf32>
    %293 = arith.addf %273, %292 : vector<8x32xf32>
    %294 = arith.mulf %281, %293 : vector<8x32xf32>
    %295 = arith.addf %291, %294 : vector<8x32xf32>
    %296 = math.tanh %295 : vector<8x32xf32>
    %cst_116 = arith.constant 1.000000e+00 : f32
    %297 = vector.broadcast %cst_116 : f32 to vector<8x32xf32>
    %298 = arith.subf %297, %289 : vector<8x32xf32>
    %299 = arith.mulf %298, %296 : vector<8x32xf32>
    %300 = arith.mulf %289, %266 : vector<8x32xf32>
    %301 = arith.addf %299, %300 : vector<8x32xf32>
    %302 = arith.index_cast %270 : i32 to index
    %c0_117 = arith.constant 0 : index
    %303 = vector.load %arg12[%302, %c0_117] : memref<64x32xf32, #tpu.memory_space<vmem>>, vector<8x32xf32>
    tpu.vector_store %arg12[%302, %c0_117], %301 {strides = array<i32>} : memref<64x32xf32, #tpu.memory_space<vmem>>, vector<8x32xf32>,
    %c8_i32_118 = arith.constant 8 : i32
    %c0_119 = arith.constant 0 : index
    %c0_120 = arith.constant 0 : index
    %304 = vector.load %arg13[%c0_119, %c0_120] : memref<8x32xf32, #tpu.memory_space<vmem>>, vector<8x32xf32>
    tpu.vector_store %arg13[%c0_119, %c0_120], %301 {strides = array<i32>} : memref<8x32xf32, #tpu.memory_space<vmem>>, vector<8x32xf32>,
    return
  }
}

</mosaic_0001>

<bundles_post_ra>
// kernel: tpu_custom_call.1
= control target key start
LH: loop header
LB: loop body
LE: loop exit
PB: predicated region body
PF: predicated region fallthrough
CT: control target
= control target key end

     0   :  { %19 = vsyncpa [#allocation6], 0  ;;  %s3910_s0 = inlined_call_operand.vmem [shape: f32[64,32], index: 0, kind: input, shape index: {}]   ;;  %s3911_s1 = inlined_call_operand.hbm [shape: f32[8,32], index: 1, kind: input, shape index: {}]   ;;  %s3912_s2 = inlined_call_operand.vmem [shape: f32[32,32], index: 2, kind: input, shape index: {}]   ;;  %s3913_s3 = inlined_call_operand.vmem [shape: f32[32,32], index: 3, kind: input, shape index: {}]   ;;  %s3914_s4 = inlined_call_operand.vmem [shape: f32[32,32], index: 4, kind: input, shape index: {}]   ;;  %s3915_s5 = inlined_call_operand.hbm [shape: f32[32,32], index: 5, kind: input, shape index: {}]   ;;  %s3916_s6 = inlined_call_operand.hbm [shape: f32[32,32], index: 6, kind: input, shape index: {}]   ;;  %s3917_s7 = inlined_call_operand.hbm [shape: f32[32,32], index: 7, kind: input, shape index: {}]   ;;  %s3918_s8 = inlined_call_operand.vmem [shape: f32[1,32], index: 8, kind: input, shape index: {}]   ;;  %s3919_s9 = inlined_call_operand.vmem [shape: f32[1,32], index: 9, kind: input, shape index: {}]   ;;  %s3920_s10 = inlined_call_operand.vmem [shape: f32[1,32], index: 10, kind: input, shape index: {}]   ;;  %s3921_s11 = inlined_call_operand.vmem [shape: f32[1,32], index: 11, kind: input, shape index: {}]   ;;  %s3922_s12 = inlined_call_operand.vmem [shape: f32[64,32], index: 12, kind: output, shape index: {0}]   ;;  %s3923_s13 = inlined_call_operand.hbm [shape: f32[8,32], index: 13, kind: output, shape index: {1}]  }
   0x1   :  { %20 = vsyncpa [#allocation9], 0 }
   0x2   :  { %21 = vsyncpa [#allocation12], 0 }
   0x3   :  { %22 = vsyncpa [#allocation7], 0  ;;  %s3407_s25 = smov [#allocation8]   ;;  %s3289_s29 = scalar_lea.hbm %s3915_s5, 512 }
   0x4   :  { %s46_s26 = sshll.u32 %s3407_s25, 4  ;;  %p3290_p0 = scmp.ne.s32.totalorder %s3915_s5, %s3289_s29  ;;  %s47_s26 = int_to_ptr.vmem [resolvable:$true] %s46_s26 }
   0x5   :  { %p3293_p1 = scmp.lt.u32.totalorder %s3289_s29, %s3915_s5 }
   0x7   :  { %p3295_p2 = pnand %p3293_p1, %p3290_p0 }
   0x9   :  { %3298 = shalt.err (!%p3295_p2)
}
   0xa   :  { %s3299_s17 = scalar_lea.vmem %s47_s26, 512  ;;  %p3304_p4 = scmp.lt.s32.totalorder %s47_s26, %s47_s26 }
   0xb   :  { %p3300_p3 = scmp.ne.s32.totalorder %s47_s26, %s3299_s17  ;;  %p3305_p5 = scmp.lt.s32.totalorder %s3299_s17, %s3299_s17 }
   0xd   :  { %p3306_p6 = por %p3305_p5, %p3304_p4 }
   0xf   :  { %p3307_p7 = pnand %p3306_p6, %p3300_p3 }
  0x11   :  { %3310 = shalt.err (!%p3307_p7)
}
  0x12   :  { %s3408_s18 = smov 128   ;;  %s3409_s19 = smov 8  }
  0x13   :  { %52 = dma.hbm_to_vmem [thread:$0]  %s3915_s5, 512, %s47_s26, [#allocation9], %s3408_s18, %s3408_s18, %s3409_s19  }
  0x14   :  { %s3410_s22 = smov [#allocation5]   ;;  %s3411_s24 = smov [#allocation10]  }
  0x15   :  { %s31_s23 = sshll.u32 %s3410_s22, 4  ;;  %s58_s25 = sshll.u32 %s3411_s24, 4  ;;  %s32_s23 = int_to_ptr.vmem [resolvable:$true] %s31_s23  ;;  %s59_s25 = int_to_ptr.vmem [resolvable:$true] %s58_s25 }
  0x16   :  { %s3311_s29 = scalar_lea.hbm %s3911_s1, 128 }
  0x17   :  { %p3312_p8 = scmp.ne.s32.totalorder %s3911_s1, %s3311_s29  ;;  %p3315_p9 = scmp.lt.u32.totalorder %s3311_s29, %s3911_s1 }
  0x19   :  { %p3317_p10 = pnand %p3315_p9, %p3312_p8 }
  0x1b   :  { %3320 = shalt.err (!%p3317_p10)
}
  0x1c   :  { %s3321_s5 = scalar_lea.vmem %s32_s23, 128  ;;  %p3326_p12 = scmp.lt.s32.totalorder %s32_s23, %s32_s23 }
  0x1d   :  { %p3322_p11 = scmp.ne.s32.totalorder %s32_s23, %s3321_s5  ;;  %p3327_p13 = scmp.lt.s32.totalorder %s3321_s5, %s3321_s5 }
  0x1f   :  { %p3328_p0 = por %p3327_p13, %p3326_p12 }
  0x21   :  { %p3329_p1 = pnand %p3328_p0, %p3322_p11 }
  0x23   :  { %3332 = shalt.err (!%p3329_p1)
}
  0x24   :  { %34 = dma.hbm_to_vmem [thread:$0]  %s3911_s1, 128, %s32_s23, [#allocation6]  }
  0x25   :  { %s3333_s22 = scalar_lea.hbm %s3916_s6, 512 }
  0x26   :  { %p3334_p2 = scmp.ne.s32.totalorder %s3916_s6, %s3333_s22  ;;  %p3337_p3 = scmp.lt.u32.totalorder %s3333_s22, %s3916_s6 }
  0x28   :  { %p3339_p4 = pnand %p3337_p3, %p3334_p2 }
  0x2a   :  { %3342 = shalt.err (!%p3339_p4)
}
  0x2b   :  { %s3343_s30 = scalar_lea.vmem %s59_s25, 512  ;;  %p3348_p6 = scmp.lt.s32.totalorder %s59_s25, %s59_s25 }
  0x2c   :  { %p3344_p5 = scmp.ne.s32.totalorder %s59_s25, %s3343_s30  ;;  %p3349_p7 = scmp.lt.s32.totalorder %s3343_s30, %s3343_s30 }
  0x2e   :  { %p3350_p8 = por %p3349_p7, %p3348_p6 }
  0x30   :  { %p3351_p9 = pnand %p3350_p8, %p3344_p5 }
  0x32   :  { %3354 = shalt.err (!%p3351_p9)
}
  0x33   :  { %64 = dma.hbm_to_vmem [thread:$0]  %s3916_s6, 512, %s59_s25, [#allocation9], %s3408_s18, %s3408_s18, %s3409_s19  }
  0x34   :  { %s3412_s14 = smov [#allocation11]   ;;  %s3355_s26 = scalar_lea.hbm %s3917_s7, 512 }
  0x35   :  { %s70_s15 = sshll.u32 %s3412_s14, 4  ;;  %p3356_p10 = scmp.ne.s32.totalorder %s3917_s7, %s3355_s26  ;;  %s71_s15 = int_to_ptr.vmem [resolvable:$true] %s70_s15 }
  0x36   :  { %p3359_p11 = scmp.lt.u32.totalorder %s3355_s26, %s3917_s7 }
  0x38   :  { %p3361_p12 = pnand %p3359_p11, %p3356_p10 }
  0x3a   :  { %3364 = shalt.err (!%p3361_p12)
}
  0x3b   :  { %s3365_s24 = scalar_lea.vmem %s71_s15, 512  ;;  %p3370_p0 = scmp.lt.s32.totalorder %s71_s15, %s71_s15 }
  0x3c   :  { %p3366_p13 = scmp.ne.s32.totalorder %s71_s15, %s3365_s24  ;;  %p3371_p1 = scmp.lt.s32.totalorder %s3365_s24, %s3365_s24 }
  0x3e   :  { %p3372_p2 = por %p3371_p1, %p3370_p0 }
  0x40   :  { %p3373_p3 = pnand %p3372_p2, %p3366_p13 }
  0x42   :  { %3376 = shalt.err (!%p3373_p3)
}
  0x43   :  { %76 = dma.hbm_to_vmem [thread:$0]  %s3917_s7, 512, %s71_s15, [#allocation12], %s3408_s18, %s3408_s18, %s3409_s19  }
  0x44   :  { %3399 = dma.done.wait [#allocation6], 128  }
  0x45   :  { %3400 = vsyncadd [#allocation6], 4294967168 }
  0x46   :  { %3401 = dma.done.wait [#allocation9], 1024  }
  0x47   :  { %3402 = vsyncadd [#allocation9], 4294966272 }
  0x48   :  { %3403 = dma.done.wait [#allocation12], 512  }
  0x49   :  { %3404 = vsyncadd [#allocation12], 4294966784  ;;  %v254_v0 = vld [vmem:[%s3913_s3] sm:$0xff]  ;;  %v255_v1 = vld [vmem:[%s3913_s3 + $0x8] sm:$0xff]  ;;  %vm116_vm0 = vcmask 261120   ;;  %v3413_v22 = vmov 0.0|0.0  }
  0x4a   :  { %v256_v2 = vld [vmem:[%s3913_s3 + $0x10] sm:$0xff]  ;;  %v3039_v3 = vpack.c.bf16 %v255_v1, %v254_v0  ;;  %v257_v4 = vld [vmem:[%s3913_s3 + $0x18] sm:$0xff]  ;;  %v105_v5 = vld [vmem:[%s3912_s2] sm:$0xff]  ;;  %vm3414_vm1 = vmmov 0   ;;  %v3415_v37 = vmov 0.0   ;;  %s3416_s14 = smov [#allocation13]  }
  0x4b   :  { %v106_v6 = vld [vmem:[%s3912_s2 + $0x8] sm:$0xff]  ;;  %v3043_v7 = vpack.c.bf16 %v257_v4, %v256_v2  ;;  %v3565_v9 = vld [vmem:[%s3910_s0] sm:$0xff]  ;;  %v107_v10 = vld [vmem:[%s3912_s2 + $0x10] sm:$0xff]  ;;  %s2463_s15 = sshll.u32 %s3416_s14, 4  ;;  %s2464_s15 = int_to_ptr.vmem [resolvable:$true] %s2463_s15 }
  0x4c   :  { %v3031_v8 = vpack.c.bf16 %v106_v6, %v105_v5  ;;  %3040 = vmatprep.subr.bf16.mxu1 %v3039_v3  ;;  %2735 = vmatprep.mubr.msk.f32.mxu1 %vm116_vm0, %v3565_v9  ;;  %v108_v11 = vld [vmem:[%s3912_s2 + $0x18] sm:$0xff]  ;;  %v502_v13 = vld [vmem:[#allocation8] sm:$0xff]  ;;  %v503_v14 = vld [vmem:[#allocation8 + $0x8] sm:$0xff]  ;;  %s3377_s26 = scalar_lea.vmem %s2464_s15, 128  ;;  %p3382_p5 = scmp.lt.s32.totalorder %s2464_s15, %s2464_s15 }
  0x4d   :  { %3042 = vmatpush3.bf16.msra.mxu1 %v3039_v3  ;;  %v3035_v12 = vpack.c.bf16 %v108_v11, %v107_v10  ;;  %2715 = vmatprep.mubr.msk.f32.mxu0 %vm116_vm0, %v3565_v9  ;;  %v378_v15 = vld [vmem:[%s3914_s4] sm:$0xff]  ;;  %v379_v16 = vld [vmem:[%s3914_s4 + $0x8] sm:$0xff]  ;;  %v3586_v19 = vpack.c.bf16 %v503_v14, %v502_v13  ;;  %v380_v20 = vld [vmem:[%s3914_s4 + $0x10] sm:$0xff]  ;;  %p3378_p4 = scmp.ne.s32.totalorder %s2464_s15, %s3377_s26  ;;  %p3383_p6 = scmp.lt.s32.totalorder %s3377_s26, %s3377_s26 }
  0x4e   :  { %3032 = vmatprep.subr.bf16.mxu0 %v3031_v8  ;;  %3044 = vmatprep.subr.bf16.mxu1 %v3043_v7  ;;  %v3047_v17 = vpack.c.bf16 %v379_v16, %v378_v15  ;;  %v98_v18 = vld [vmem:[%s3910_s0 + $0x8] sm:$0xff]  ;;  %v381_v21 = vld [vmem:[%s3914_s4 + $0x18] sm:$0xff]  ;;  %v99_v23 = vld [vmem:[%s3910_s0 + $0x10] sm:$0xff] }
  0x4f   :  { %3034 = vmatpush3.bf16.msra.mxu0 %v3031_v8  ;;  %v504_v24 = vld [vmem:[#allocation8 + $0x10] sm:$0xff]  ;;  %v505_v25 = vld [vmem:[#allocation8 + $0x18] sm:$0xff]  ;;  %v3051_v26 = vpack.c.bf16 %v381_v21, %v380_v20  ;;  %v102_v30 = vld [vmem:[%s3910_s0 + $0x28] sm:$0xff]  ;;  %p3384_p7 = por %p3383_p6, %p3382_p5 }
  0x50   :  { %3036 = vmatprep.subr.bf16.mxu0 %v3035_v12  ;;  %v100_v27 = vld [vmem:[%s3910_s0 + $0x18] sm:$0xff]  ;;  %v3604_v28 = vpack.c.bf16 %v505_v25, %v504_v24  ;;  %v101_v29 = vld [vmem:[%s3910_s0 + $0x20] sm:$0xff]  ;;  %v103_v31 = vld [vmem:[%s3910_s0 + $0x30] sm:$0xff] }
  0x51   :  { %3046 = vmatpush3.bf16.msra.mxu1 %v3043_v7  ;;  %v104_v32 = vld [vmem:[%s3910_s0 + $0x38] sm:$0xff]  ;;  %v506_v33 = vld [vmem:[#allocation10] sm:$0xff]  ;;  %v507_v34 = vld [vmem:[#allocation10 + $0x8] sm:$0xff]  ;;  %p3385_p8 = pnand %p3384_p7, %p3378_p4 }
  0x52   :  { %3055 = vmatprep.subr.bf16.mxu1 %v3413_v22  ;;  %v510_v35 = vld [vmem:[#allocation11] sm:$0xff]  ;;  %v511_v36 = vld [vmem:[#allocation11 + $0x8] sm:$0xff]  ;;  %v3635_v38 = vld [vmem:[#allocation5] sm:$0xff]  ;;  %v3637_v39 = vpack.c.bf16 %v507_v34, %v506_v33 }
  0x53   :  { %3038 = vmatpush3.bf16.msra.mxu0 %v3035_v12  ;;  %v508_v40 = vld [vmem:[#allocation10 + $0x10] sm:$0xff]  ;;  %v509_v41 = vld [vmem:[#allocation10 + $0x18] sm:$0xff]  ;;  %v3642_v42 = vpack.c.bf16 %v511_v36, %v510_v35 }
  0x54   :  { %3048 = vmatprep.subr.bf16.mxu0 %v3047_v17  ;;  %2736 = vmatmul.mubr.msk.f32.vlgmr.msra.gmra.mrb[0].mxu1 %vm116_vm0, %v98_v18  ;;  %v512_v43 = vld [vmem:[#allocation11 + $0x10] sm:$0xff]  ;;  %v513_v44 = vld [vmem:[#allocation11 + $0x18] sm:$0xff]  ;;  %v3647_v45 = vpack.c.bf16 %v509_v41, %v508_v40 }
  0x55   :  { %3057 = vmatpush3.bf16.msra.mxu1 %v3586_v19  ;;  %2738 = vmatprep.mubr.msk.f32.mxu1 %vm116_vm0, %v99_v23  ;;  %v3655_v46 = vpack.c.bf16 %v513_v44, %v512_v43  ;;  %v2485_v47 = vld [vmem:[%s3919_s9] ss:$0 sm:$0xff] }
  0x56   :  { %2716 = vmatmul.mubr.msk.f32.vlgmr.msra.gmra.mrb[0].mxu0 %vm116_vm0, %v98_v18  ;;  %3058 = vmatprep.subr.bf16.mxu1 %v3413_v22  ;;  %v2476_v49 = vld [vmem:[%s3918_s8] ss:$0 sm:$0xff] }
  0x57   :  { %3050 = vmatpush3.bf16.msra.mxu0 %v3047_v17  ;;  %2718 = vmatprep.mubr.msk.f32.mxu0 %vm116_vm0, %v99_v23  ;;  %v2494_v20 = vld [vmem:[%s3920_s10] ss:$0 sm:$0xff] }
  0x58   :  { %2739 = vmatmul.mubr.msk.f32.gmra.mrb[2].mxu1 %vm116_vm0, %v100_v27  ;;  %3052 = vmatprep.subr.bf16.mxu0 %v3051_v26 }
  0x59   :  { %2741 = vmatprep.mubr.msk.f32.mxu1 %vm116_vm0, %v101_v29  ;;  %3060 = vmatpush3.bf16.msra.mxu1 %v3604_v28 }
  0x5a   :  { %2719 = vmatmul.mubr.msk.f32.gmra.mrb[2].mxu0 %vm116_vm0, %v100_v27  ;;  %3061 = vmatprep.subr.bf16.mxu1 %v3413_v22 }
  0x5b   :  { %2721 = vmatprep.mubr.msk.f32.mxu0 %vm116_vm0, %v101_v29  ;;  %3054 = vmatpush3.bf16.msra.mxu0 %v3051_v26 }
  0x5c   :  { %2742 = vmatmul.mubr.msk.f32.gmra.mrb[4].mxu1 %vm116_vm0, %v102_v30  ;;  %3067 = vmatprep.subr.bf16.mxu0 %v3413_v22 }
  0x5d   :  { %2744 = vmatprep.mubr.msk.f32.mxu1 %vm116_vm0, %v103_v31 }
  0x5e   :  { %2722 = vmatmul.mubr.msk.f32.gmra.mrb[4].mxu0 %vm116_vm0, %v102_v30 }
  0x5f   :  { %2724 = vmatprep.mubr.msk.f32.mxu0 %vm116_vm0, %v103_v31 }
  0x60   :  { %2745 = vmatmul.mubr.msk.f32.gmra.mrb[6].mxu1 %vm116_vm0, %v104_v32 }
  0x61   :  { %2775 = vmatprep.mubr.msk.f32.mxu1 %vm3414_vm1, %v3415_v37 }
  0x62   :  { %2725 = vmatmul.mubr.msk.f32.gmra.mrb[6].mxu0 %vm116_vm0, %v104_v32 }
  0x63   :  { %2755 = vmatprep.mubr.msk.f32.mxu0 %vm116_vm0, %v3565_v9 }
  0x64   :  { %2776 = vmatmul.mubr.msk.f32.vlgmr.msra.gmra.mrb[8].mxu1 %vm116_vm0, %v3635_v38 }
  0x65   :  { %3063 = vmatpush3.bf16.msra.mxu1 %v3637_v39  ;;  %2786 = vmatprep.mubr.msk.f32.mxu1 %vm3414_vm1, %v3415_v37 }
  0x66   :  { %3064 = vmatprep.subr.bf16.mxu1 %v3413_v22  ;;  %2756 = vmatmul.mubr.msk.f32.vlgmr.msra.gmra.mrb[8].mxu0 %vm116_vm0, %v98_v18 }
  0x67   :  { %3069 = vmatpush3.bf16.msra.mxu0 %v3642_v42  ;;  %2758 = vmatprep.mubr.msk.f32.mxu0 %vm116_vm0, %v99_v23 }
  0x68   :  { %3070 = vmatprep.subr.bf16.mxu0 %v3413_v22 }
  0x69   :  { %3066 = vmatpush3.bf16.msra.mxu1 %v3647_v45 }
  0x6a   :  { %2759 = vmatmul.mubr.msk.f32.gmra.mrb[10].mxu0 %vm116_vm0, %v100_v27  ;;  %3073 = vmatprep.subr.bf16.mxu1 %v3413_v22 }
  0x6b   :  { %2761 = vmatprep.mubr.msk.f32.mxu0 %vm116_vm0, %v101_v29  ;;  %3072 = vmatpush3.bf16.msra.mxu0 %v3655_v46 }
  0x6c   :  { %2787 = vmatmul.mubr.msk.f32.vlgmr.msra.gmra.mrb[10].mxu1 %vm116_vm0, %v3635_v38  ;;  %3079 = vmatprep.subr.bf16.mxu0 %v3413_v22 }
  0x6d   :  { %3075 = vmatpush3.bf16.msra.mxu1 %v3586_v19  ;;  %2808 = vmatprep.mubr.msk.f32.mxu1 %vm3414_vm1, %v3415_v37 }
  0x6e   :  { %2762 = vmatmul.mubr.msk.f32.gmra.mrb[12].mxu0 %vm116_vm0, %v102_v30  ;;  %3076 = vmatprep.subr.bf16.mxu1 %v3413_v22 }
  0x6f   :  { %2764 = vmatprep.mubr.msk.f32.mxu0 %vm116_vm0, %v103_v31 }
  0x71   :  { %3078 = vmatpush3.bf16.msra.mxu1 %v3604_v28 }
  0x72   :  { %2765 = vmatmul.mubr.msk.f32.gmra.mrb[14].mxu0 %vm116_vm0, %v104_v32  ;;  %3085 = vmatprep.subr.bf16.mxu1 %v3413_v22 }
  0x73   :  { %2797 = vmatprep.mubr.msk.f32.mxu0 %vm3414_vm1, %v3415_v37 }
  0x76   :  { %2798 = vmatmul.mubr.msk.f32.vlgmr.msra.gmra.mrb[16].mxu0 %vm116_vm0, %v3635_v38 }
  0x77   :  { %3081 = vmatpush3.bf16.msra.mxu0 %v3637_v39  ;;  %2819 = vmatprep.mubr.msk.f32.mxu0 %vm3414_vm1, %v3415_v37 }
  0x78   :  { %3082 = vmatprep.subr.bf16.mxu0 %v3413_v22 }
  0x7b   :  { %3084 = vmatpush3.bf16.msra.mxu0 %v3647_v45 }
  0x7c   :  { %3091 = vmatprep.subr.bf16.mxu0 %v3413_v22 }
 0x127   :  { %v2737_v48 = vpop.f32.mrb[0].mxu1 }
 0x128   :  { %v337_v50 = vadd.f32 %v2737_v48, %v2485_v47  ;;  %v331_v51 = vpop.f32.mrb[1].mxu1 }
 0x129   :  { %v332_v52 = vadd.f32 %v2485_v47, %v331_v51  ;;  %v2717_v53 = vpop.f32.mrb[0].mxu0 }
 0x12a   :  { %371 = vst.msk [vmem:[#allocation3 + $0x8] sm:$0xff] %vm116_vm0, %v337_v50  ;;  %v213_v54 = vadd.f32 %v2717_v53, %v2476_v49  ;;  %v207_v55 = vpop.f32.mrb[1].mxu0 }
 0x12b   :  { %370 = vst.msk [vmem:[#allocation3] sm:$0xff] %vm116_vm0, %v332_v52  ;;  %v2740_v56 = vpop.f32.mrb[2].mxu1  ;;  %v208_v57 = vadd.f32 %v2476_v49, %v207_v55 }
 0x12c   :  { %v347_v58 = vadd.f32 %v2740_v56, %v2485_v47  ;;  %247 = vst.msk [vmem:[#allocation2 + $0x8] sm:$0xff] %vm116_vm0, %v213_v54  ;;  %v341_v59 = vpop.f32.mrb[3].mxu1 }
 0x12d   :  { %v342_v60 = vadd.f32 %v2485_v47, %v341_v59  ;;  %246 = vst.msk [vmem:[#allocation2] sm:$0xff] %vm116_vm0, %v208_v57  ;;  %v2720_v61 = vpop.f32.mrb[2].mxu0  ;;  %v3721_v57 = vld [vmem:[%s3921_s11] ss:$0 sm:$0xff] }
 0x12e   :  { %373 = vst.msk [vmem:[#allocation3 + $0x18] sm:$0xff] %vm116_vm0, %v347_v58  ;;  %v223_v62 = vadd.f32 %v2720_v61, %v2476_v49  ;;  %v217_v63 = vpop.f32.mrb[3].mxu0 }
 0x12f   :  { %372 = vst.msk [vmem:[#allocation3 + $0x10] sm:$0xff] %vm116_vm0, %v342_v60  ;;  %v2743_v0 = vpop.f32.mrb[4].mxu1  ;;  %v218_v1 = vadd.f32 %v2476_v49, %v217_v63 }
 0x130   :  { %v357_v2 = vadd.f32 %v2743_v0, %v2485_v47  ;;  %v351_v3 = vpop.f32.mrb[5].mxu1  ;;  %249 = vst.msk [vmem:[#allocation2 + $0x18] sm:$0xff] %vm116_vm0, %v223_v62 }
 0x131   :  { %v352_v4 = vadd.f32 %v2485_v47, %v351_v3  ;;  %248 = vst.msk [vmem:[#allocation2 + $0x10] sm:$0xff] %vm116_vm0, %v218_v1  ;;  %v2723_v5 = vpop.f32.mrb[4].mxu0 }
 0x132   :  { %375 = vst.msk [vmem:[#allocation3 + $0x28] sm:$0xff] %vm116_vm0, %v357_v2  ;;  %v233_v6 = vadd.f32 %v2723_v5, %v2476_v49  ;;  %v227_v7 = vpop.f32.mrb[5].mxu0  ;;  %v667_v34 = vld [vmem:[#allocation3] sm:$0xff] }
 0x133   :  { %374 = vst.msk [vmem:[#allocation3 + $0x20] sm:$0xff] %vm116_vm0, %v352_v4  ;;  %v2746_v8 = vpop.f32.mrb[6].mxu1  ;;  %v228_v9 = vadd.f32 %v2476_v49, %v227_v7  ;;  %v904_v7 = vld [vmem:[#allocation2 + $0x8] sm:$0xff] }
 0x134   :  { %v367_v10 = vadd.f32 %v2746_v8, %v2485_v47  ;;  %v361_v11 = vpop.f32.mrb[7].mxu1  ;;  %251 = vst.msk [vmem:[#allocation2 + $0x28] sm:$0xff] %vm116_vm0, %v233_v6  ;;  %v659_v13 = vld [vmem:[#allocation2] sm:$0xff] }
 0x135   :  { %v362_v12 = vadd.f32 %v2485_v47, %v361_v11  ;;  %250 = vst.msk [vmem:[#allocation2 + $0x20] sm:$0xff] %vm116_vm0, %v228_v9  ;;  %v2726_v14 = vpop.f32.mrb[6].mxu0 }
 0x136   :  { %377 = vst.msk [vmem:[#allocation3 + $0x38] sm:$0xff] %vm116_vm0, %v367_v10  ;;  %v243_v15 = vadd.f32 %v2726_v14, %v2476_v49  ;;  %v237_v16 = vpop.f32.mrb[7].mxu0 }
 0x137   :  { %376 = vst.msk [vmem:[#allocation3 + $0x30] sm:$0xff] %vm116_vm0, %v362_v12  ;;  %v585_v17 = vpop.f32.mrb[8].mxu1  ;;  %v238_v18 = vadd.f32 %v2476_v49, %v237_v16 }
 0x138   :  { %v660_v21 = vadd.f32 %v659_v13, %v585_v17  ;;  %v2777_v23 = vpop.f32.mrb[9].mxu1  ;;  %253 = vst.msk [vmem:[#allocation2 + $0x38] sm:$0xff] %vm116_vm0, %v243_v15  ;;  %v913_v13 = vld [vmem:[#allocation3 + $0x8] sm:$0xff] }
 0x139   :  { %252 = vst.msk [vmem:[#allocation2 + $0x30] sm:$0xff] %vm116_vm0, %v238_v18  ;;  %v2757_v24 = vpop.f32.mrb[8].mxu0 }
 0x13a   :  { %v2505_v25 = vmul.f32 -1.442695, %v660_v21  ;;  %v461_v26 = vadd.f32 %v2757_v24, %v2494_v20  ;;  %v455_v27 = vpop.f32.mrb[9].mxu0 }
 0x13b   :  { %v456_v29 = vadd.f32 %v2494_v20, %v455_v27 }
 0x13c   :  { %3209 = vpow2.f32 %v2505_v25  ;;  %495 = vst.msk [vmem:[#allocation4 + $0x8] sm:$0xff] %vm116_vm0, %v461_v26 }
 0x13d   :  { %494 = vst.msk [vmem:[#allocation4] sm:$0xff] %vm116_vm0, %v456_v29  ;;  %v2760_v30 = vpop.f32.mrb[10].mxu0 }
 0x13e   :  { %v471_v31 = vadd.f32 %v2760_v30, %v2494_v20  ;;  %v465_v32 = vpop.f32.mrb[11].mxu0 }
 0x13f   :  { %v655_v33 = vpop.f32.mrb[10].mxu1  ;;  %v466_v35 = vadd.f32 %v2494_v20, %v465_v32 }
 0x140   :  { %v668_v36 = vadd.f32 %v667_v34, %v655_v33  ;;  %497 = vst.msk [vmem:[#allocation4 + $0x18] sm:$0xff] %vm116_vm0, %v471_v31  ;;  %v2788_v40 = vpop.f32.mrb[11].mxu1 }
 0x141   :  { %496 = vst.msk [vmem:[#allocation4 + $0x10] sm:$0xff] %vm116_vm0, %v466_v35  ;;  %v2763_v41 = vpop.f32.mrb[12].mxu0  ;;  %v1146_v40 = vld [vmem:[#allocation2 + $0x10] sm:$0xff] }
 0x142   :  { %v2506_v43 = vmul.f32 -1.442695, %v668_v36  ;;  %v481_v44 = vadd.f32 %v2763_v41, %v2494_v20  ;;  %v475_v47 = vpop.f32.mrb[13].mxu0 }
 0x143   :  { %v476_v48 = vadd.f32 %v2494_v20, %v475_v47  ;;  %v922_v27 = vld [vmem:[#allocation4 + $0x8] sm:$0xff] }
 0x144   :  { %3211 = vpow2.f32 %v2506_v43  ;;  %499 = vst.msk [vmem:[#allocation4 + $0x28] sm:$0xff] %vm116_vm0, %v481_v44  ;;  %v675_v63 = vld [vmem:[#allocation4] sm:$0xff] }
 0x145   :  { %498 = vst.msk [vmem:[#allocation4 + $0x20] sm:$0xff] %vm116_vm0, %v476_v48  ;;  %v2766_v49 = vpop.f32.mrb[14].mxu0 }
 0x146   :  { %v3210_v50 = vpop.eup %3209  ;;  %v491_v51 = vadd.f32 %v2766_v49, %v2494_v20  ;;  %v485_v52 = vpop.f32.mrb[15].mxu0  ;;  %v1155_v49 = vld [vmem:[#allocation3 + $0x10] sm:$0xff] }
 0x147   :  { %v664_v53 = vadd.f32 1.0, %v3210_v50  ;;  %v486_v54 = vadd.f32 %v2494_v20, %v485_v52 }
 0x148   :  { %501 = vst.msk [vmem:[#allocation4 + $0x38] sm:$0xff] %vm116_vm0, %v491_v51 }
 0x149   :  { %3213 = vrcp.f32 %v664_v53  ;;  %500 = vst.msk [vmem:[#allocation4 + $0x30] sm:$0xff] %vm116_vm0, %v486_v54  ;;  %v748_v55 = vpop.f32.mrb[16].mxu0 }
 0x14a   :  { %v2799_v56 = vpop.f32.mrb[17].mxu0  ;;  %v749_v60 = vadd.f32 %v3721_v57, %v748_v55 }
 0x14e   :  { %v3212_v58 = vpop.eup %3211 }
 0x14f   :  { %v672_v59 = vadd.f32 1.0, %v3212_v58 }
 0x151   :  { %3215 = vrcp.f32 %v672_v59 }
 0x153   :  { %v3214_v61 = vpop.eup %3213 }
 0x154   :  { %v752_v62 = vmul.f32 %v3214_v61, %v749_v60 }
 0x156   :  { %v753_v0 = vadd.f32 %v752_v62, %v675_v63  ;;  %v1164_v62 = vld [vmem:[#allocation4 + $0x10] sm:$0xff] }
 0x158   :  { %3217 = vtanh.f32 %v753_v0 }
 0x15b   :  { %v3216_v1 = vpop.eup %3215 }
 0x15c   :  { %v755_v2 = vsub.f32 1.0, %v3216_v1  ;;  %v757_v5 = vmul.f32 %v3216_v1, %v3635_v38 }
 0x162   :  { %v3218_v3 = vpop.eup %3217 }
 0x163   :  { %v756_v4 = vmul.f32 %v3218_v3, %v755_v2 }
 0x165   :  { %v758_v6 = vadd.f32 %v757_v5, %v756_v4 }
 0x167   :  { %759 = vst.msk [vmem:[%s3922_s12] sm:$0xff] %vm116_vm0, %v758_v6  ;;  %2809 = vmatmul.mubr.msk.f32.vlgmr.msra.gmra.mrb[12].mxu1 %vm116_vm0, %v758_v6  ;;  %2820 = vmatmul.mubr.msk.f32.vlgmr.msra.gmra.mrb[18].mxu0 %vm116_vm0, %v758_v6 }
 0x168   :  { %3087 = vmatpush3.bf16.msra.mxu1 %v3642_v42  ;;  %2830 = vmatprep.mubr.msk.f32.mxu1 %vm3414_vm1, %v3415_v37 }
 0x169   :  { %3088 = vmatprep.subr.bf16.mxu1 %v3413_v22  ;;  %3093 = vmatpush3.bf16.msra.mxu0 %v3586_v19 }
 0x16a   :  { %3094 = vmatprep.subr.bf16.mxu0 %v3413_v22  ;;  %2841 = vmatprep.mubr.msk.f32.mxu0 %vm3414_vm1, %v3415_v37 }
 0x16c   :  { %3090 = vmatpush3.bf16.msra.mxu1 %v3655_v46 }
 0x16d   :  { %3097 = vmatprep.subr.bf16.mxu1 %v3413_v22  ;;  %3096 = vmatpush3.bf16.msra.mxu0 %v3604_v28 }
 0x16e   :  { %3103 = vmatprep.subr.bf16.mxu0 %v3413_v22 }
 0x16f   :  { %2831 = vmatmul.mubr.msk.f32.vlgmr.msra.gmra.mrb[14].mxu1 %vm116_vm0, %v758_v6 }
 0x170   :  { %3099 = vmatpush3.bf16.msra.mxu1 %v3637_v39  ;;  %2852 = vmatprep.mubr.msk.f32.mxu1 %vm3414_vm1, %v3415_v37 }
 0x171   :  { %3100 = vmatprep.subr.bf16.mxu1 %v3413_v22 }
 0x174   :  { %3102 = vmatpush3.bf16.msra.mxu1 %v3647_v45 }
 0x175   :  { %3109 = vmatprep.subr.bf16.mxu1 %v3413_v22 }
 0x23a   :  { %v829_v38 = vpop.f32.mrb[12].mxu1  ;;  %v899_v8 = vpop.f32.mrb[18].mxu0 }
 0x23b   :  { %v905_v9 = vadd.f32 %v904_v7, %v829_v38  ;;  %v2810_v10 = vpop.f32.mrb[13].mxu1  ;;  %v2821_v11 = vpop.f32.mrb[19].mxu0  ;;  %v914_v14 = vadd.f32 %v913_v13, %v899_v8  ;;  %v1388_v38 = vld [vmem:[#allocation2 + $0x18] sm:$0xff] }
 0x23d   :  { %v2511_v12 = vmul.f32 -1.442695, %v905_v9  ;;  %v2512_v15 = vmul.f32 -1.442695, %v914_v14 }
 0x23f   :  { %3219 = vpow2.f32 %v2511_v12  ;;  %v1397_v12 = vld [vmem:[#allocation3 + $0x18] sm:$0xff] }
 0x240   :  { %3221 = vpow2.f32 %v2512_v15 }
 0x242   :  { %v989_v16 = vpop.f32.mrb[14].mxu1 }
 0x243   :  { %v2832_v17 = vpop.f32.mrb[15].mxu1  ;;  %v990_v24 = vadd.f32 %v3721_v57, %v989_v16 }
 0x249   :  { %v3220_v18 = vpop.eup %3219 }
 0x24a   :  { %v909_v20 = vadd.f32 1.0, %v3220_v18  ;;  %v3222_v21 = vpop.eup %3221 }
 0x24b   :  { %v918_v23 = vadd.f32 1.0, %v3222_v21 }
 0x24c   :  { %3223 = vrcp.f32 %v909_v20 }
 0x24d   :  { %3225 = vrcp.f32 %v918_v23 }
 0x256   :  { %v3224_v25 = vpop.eup %3223 }
 0x257   :  { %v993_v26 = vmul.f32 %v3224_v25, %v990_v24  ;;  %v3226_v30 = vpop.eup %3225 }
 0x258   :  { %v996_v31 = vsub.f32 1.0, %v3226_v30  ;;  %v998_v34 = vmul.f32 %v3226_v30, %v758_v6 }
 0x259   :  { %v994_v29 = vadd.f32 %v993_v26, %v922_v27  ;;  %v1406_v26 = vld [vmem:[#allocation4 + $0x18] sm:$0xff] }
 0x25b   :  { %3227 = vtanh.f32 %v994_v29 }
 0x265   :  { %v3228_v32 = vpop.eup %3227 }
 0x266   :  { %v997_v33 = vmul.f32 %v3228_v32, %v996_v31 }
 0x268   :  { %v999_v35 = vadd.f32 %v998_v34, %v997_v33 }
 0x26a   :  { %2514 = vst.msk [vmem:[%s3922_s12 + $0x8] sm:$0xff] %vm116_vm0, %v999_v35  ;;  %2842 = vmatmul.mubr.msk.f32.vlgmr.msra.gmra.mrb[20].mxu0 %vm116_vm0, %v999_v35  ;;  %2853 = vmatmul.mubr.msk.f32.vlgmr.msra.gmra.mrb[16].mxu1 %vm116_vm0, %v999_v35 }
 0x26b   :  { %3105 = vmatpush3.bf16.msra.mxu0 %v3642_v42  ;;  %2863 = vmatprep.mubr.msk.f32.mxu0 %vm3414_vm1, %v3415_v37 }
 0x26c   :  { %3106 = vmatprep.subr.bf16.mxu0 %v3413_v22  ;;  %3111 = vmatpush3.bf16.msra.mxu1 %v3586_v19 }
 0x26d   :  { %3112 = vmatprep.subr.bf16.mxu1 %v3413_v22  ;;  %2874 = vmatprep.mubr.msk.f32.mxu1 %vm3414_vm1, %v3415_v37 }
 0x26f   :  { %3108 = vmatpush3.bf16.msra.mxu0 %v3655_v46 }
 0x270   :  { %3115 = vmatprep.subr.bf16.mxu0 %v3413_v22  ;;  %3114 = vmatpush3.bf16.msra.mxu1 %v3604_v28 }
 0x271   :  { %3121 = vmatprep.subr.bf16.mxu1 %v3413_v22 }
 0x272   :  { %2864 = vmatmul.mubr.msk.f32.vlgmr.msra.gmra.mrb[22].mxu0 %vm116_vm0, %v999_v35 }
 0x273   :  { %3117 = vmatpush3.bf16.msra.mxu0 %v3637_v39  ;;  %2885 = vmatprep.mubr.msk.f32.mxu0 %vm3414_vm1, %v3415_v37 }
 0x274   :  { %3118 = vmatprep.subr.bf16.mxu0 %v3413_v22 }
 0x277   :  { %3120 = vmatpush3.bf16.msra.mxu0 %v3647_v45 }
 0x278   :  { %3127 = vmatprep.subr.bf16.mxu0 %v3413_v22 }
 0x33d   :  { %v1071_v36 = vpop.f32.mrb[20].mxu0  ;;  %v1141_v41 = vpop.f32.mrb[16].mxu1 }
 0x33e   :  { %v1147_v43 = vadd.f32 %v1146_v40, %v1071_v36  ;;  %v2843_v44 = vpop.f32.mrb[21].mxu0  ;;  %v2854_v47 = vpop.f32.mrb[17].mxu1  ;;  %v1156_v50 = vadd.f32 %v1155_v49, %v1141_v41  ;;  %v1630_v36 = vld [vmem:[#allocation2 + $0x20] sm:$0xff] }
 0x340   :  { %v2517_v48 = vmul.f32 -1.442695, %v1147_v43  ;;  %v2518_v51 = vmul.f32 -1.442695, %v1156_v50 }
 0x342   :  { %3229 = vpow2.f32 %v2517_v48  ;;  %v1639_v48 = vld [vmem:[#allocation3 + $0x20] sm:$0xff] }
 0x343   :  { %3231 = vpow2.f32 %v2518_v51 }
 0x345   :  { %v1231_v52 = vpop.f32.mrb[22].mxu0 }
 0x346   :  { %v2865_v53 = vpop.f32.mrb[23].mxu0  ;;  %v1232_v59 = vadd.f32 %v3721_v57, %v1231_v52 }
 0x34c   :  { %v3230_v54 = vpop.eup %3229 }
 0x34d   :  { %v1151_v55 = vadd.f32 1.0, %v3230_v54  ;;  %v3232_v56 = vpop.eup %3231 }
 0x34e   :  { %v1160_v58 = vadd.f32 1.0, %v3232_v56 }
 0x34f   :  { %3233 = vrcp.f32 %v1151_v55 }
 0x350   :  { %3235 = vrcp.f32 %v1160_v58 }
 0x359   :  { %v3234_v60 = vpop.eup %3233 }
 0x35a   :  { %v1235_v61 = vmul.f32 %v3234_v60, %v1232_v59  ;;  %v3236_v0 = vpop.eup %3235 }
 0x35b   :  { %v1238_v1 = vsub.f32 1.0, %v3236_v0  ;;  %v1240_v4 = vmul.f32 %v3236_v0, %v999_v35 }
 0x35c   :  { %v1236_v63 = vadd.f32 %v1235_v61, %v1164_v62  ;;  %v1648_v61 = vld [vmem:[#allocation4 + $0x20] sm:$0xff] }
 0x35e   :  { %3237 = vtanh.f32 %v1236_v63 }
 0x368   :  { %v3238_v2 = vpop.eup %3237 }
 0x369   :  { %v1239_v3 = vmul.f32 %v3238_v2, %v1238_v1 }
 0x36b   :  { %v1241_v5 = vadd.f32 %v1240_v4, %v1239_v3 }
 0x36d   :  { %2520 = vst.msk [vmem:[%s3922_s12 + $0x10] sm:$0xff] %vm116_vm0, %v1241_v5  ;;  %2875 = vmatmul.mubr.msk.f32.vlgmr.msra.gmra.mrb[18].mxu1 %vm116_vm0, %v1241_v5  ;;  %2886 = vmatmul.mubr.msk.f32.vlgmr.msra.gmra.mrb[24].mxu0 %vm116_vm0, %v1241_v5 }
 0x36e   :  { %3123 = vmatpush3.bf16.msra.mxu1 %v3642_v42  ;;  %2896 = vmatprep.mubr.msk.f32.mxu1 %vm3414_vm1, %v3415_v37 }
 0x36f   :  { %3124 = vmatprep.subr.bf16.mxu1 %v3413_v22  ;;  %3129 = vmatpush3.bf16.msra.mxu0 %v3586_v19 }
 0x370   :  { %3130 = vmatprep.subr.bf16.mxu0 %v3413_v22  ;;  %2907 = vmatprep.mubr.msk.f32.mxu0 %vm3414_vm1, %v3415_v37 }
 0x372   :  { %3126 = vmatpush3.bf16.msra.mxu1 %v3655_v46 }
 0x373   :  { %3133 = vmatprep.subr.bf16.mxu1 %v3413_v22  ;;  %3132 = vmatpush3.bf16.msra.mxu0 %v3604_v28 }
 0x374   :  { %3139 = vmatprep.subr.bf16.mxu0 %v3413_v22 }
 0x375   :  { %2897 = vmatmul.mubr.msk.f32.vlgmr.msra.gmra.mrb[20].mxu1 %vm116_vm0, %v1241_v5 }
 0x376   :  { %3135 = vmatpush3.bf16.msra.mxu1 %v3637_v39  ;;  %2918 = vmatprep.mubr.msk.f32.mxu1 %vm3414_vm1, %v3415_v37 }
 0x377   :  { %3136 = vmatprep.subr.bf16.mxu1 %v3413_v22 }
 0x37a   :  { %3138 = vmatpush3.bf16.msra.mxu1 %v3647_v45 }
 0x37b   :  { %3145 = vmatprep.subr.bf16.mxu1 %v3413_v22 }
 0x440   :  { %v1313_v6 = vpop.f32.mrb[18].mxu1  ;;  %v1383_v7 = vpop.f32.mrb[24].mxu0 }
 0x441   :  { %v1389_v8 = vadd.f32 %v1388_v38, %v1313_v6  ;;  %v2876_v9 = vpop.f32.mrb[19].mxu1  ;;  %v2887_v10 = vpop.f32.mrb[25].mxu0  ;;  %v1398_v13 = vadd.f32 %v1397_v12, %v1383_v7  ;;  %v1872_v6 = vld [vmem:[#allocation2 + $0x28] sm:$0xff] }
 0x443   :  { %v2523_v11 = vmul.f32 -1.442695, %v1389_v8  ;;  %v2524_v14 = vmul.f32 -1.442695, %v1398_v13 }
 0x445   :  { %3239 = vpow2.f32 %v2523_v11  ;;  %v1881_v11 = vld [vmem:[#allocation3 + $0x28] sm:$0xff] }
 0x446   :  { %3241 = vpow2.f32 %v2524_v14 }
 0x448   :  { %v1473_v15 = vpop.f32.mrb[20].mxu1 }
 0x449   :  { %v2898_v16 = vpop.f32.mrb[21].mxu1  ;;  %v1474_v23 = vadd.f32 %v3721_v57, %v1473_v15 }
 0x44f   :  { %v3240_v17 = vpop.eup %3239 }
 0x450   :  { %v1393_v18 = vadd.f32 1.0, %v3240_v17  ;;  %v3242_v20 = vpop.eup %3241 }
 0x451   :  { %v1402_v21 = vadd.f32 1.0, %v3242_v20 }
 0x452   :  { %3243 = vrcp.f32 %v1393_v18 }
 0x453   :  { %3245 = vrcp.f32 %v1402_v21 }
 0x45c   :  { %v3244_v24 = vpop.eup %3243 }
 0x45d   :  { %v1477_v25 = vmul.f32 %v3244_v24, %v1474_v23  ;;  %v3246_v29 = vpop.eup %3245 }
 0x45e   :  { %v1480_v30 = vsub.f32 1.0, %v3246_v29  ;;  %v1482_v33 = vmul.f32 %v3246_v29, %v1241_v5 }
 0x45f   :  { %v1478_v27 = vadd.f32 %v1477_v25, %v1406_v26  ;;  %v1890_v25 = vld [vmem:[#allocation4 + $0x28] sm:$0xff] }
 0x461   :  { %3247 = vtanh.f32 %v1478_v27 }
 0x46b   :  { %v3248_v31 = vpop.eup %3247 }
 0x46c   :  { %v1481_v32 = vmul.f32 %v3248_v31, %v1480_v30 }
 0x46e   :  { %v1483_v34 = vadd.f32 %v1482_v33, %v1481_v32 }
 0x470   :  { %2526 = vst.msk [vmem:[%s3922_s12 + $0x18] sm:$0xff] %vm116_vm0, %v1483_v34  ;;  %2908 = vmatmul.mubr.msk.f32.vlgmr.msra.gmra.mrb[26].mxu0 %vm116_vm0, %v1483_v34  ;;  %2919 = vmatmul.mubr.msk.f32.vlgmr.msra.gmra.mrb[22].mxu1 %vm116_vm0, %v1483_v34 }
 0x471   :  { %3141 = vmatpush3.bf16.msra.mxu0 %v3642_v42  ;;  %2929 = vmatprep.mubr.msk.f32.mxu0 %vm3414_vm1, %v3415_v37 }
 0x472   :  { %3142 = vmatprep.subr.bf16.mxu0 %v3413_v22  ;;  %3147 = vmatpush3.bf16.msra.mxu1 %v3586_v19 }
 0x473   :  { %3148 = vmatprep.subr.bf16.mxu1 %v3413_v22  ;;  %2940 = vmatprep.mubr.msk.f32.mxu1 %vm3414_vm1, %v3415_v37 }
 0x475   :  { %3144 = vmatpush3.bf16.msra.mxu0 %v3655_v46 }
 0x476   :  { %3151 = vmatprep.subr.bf16.mxu0 %v3413_v22  ;;  %3150 = vmatpush3.bf16.msra.mxu1 %v3604_v28 }
 0x477   :  { %3157 = vmatprep.subr.bf16.mxu1 %v3413_v22 }
 0x478   :  { %2930 = vmatmul.mubr.msk.f32.vlgmr.msra.gmra.mrb[28].mxu0 %vm116_vm0, %v1483_v34 }
 0x479   :  { %3153 = vmatpush3.bf16.msra.mxu0 %v3637_v39  ;;  %2951 = vmatprep.mubr.msk.f32.mxu0 %vm3414_vm1, %v3415_v37 }
 0x47a   :  { %3154 = vmatprep.subr.bf16.mxu0 %v3413_v22 }
 0x47d   :  { %3156 = vmatpush3.bf16.msra.mxu0 %v3647_v45 }
 0x47e   :  { %3163 = vmatprep.subr.bf16.mxu0 %v3413_v22 }
 0x543   :  { %v1555_v35 = vpop.f32.mrb[26].mxu0  ;;  %v1625_v40 = vpop.f32.mrb[22].mxu1 }
 0x544   :  { %v1631_v41 = vadd.f32 %v1630_v36, %v1555_v35  ;;  %v2909_v43 = vpop.f32.mrb[27].mxu0  ;;  %v2920_v44 = vpop.f32.mrb[23].mxu1  ;;  %v1640_v49 = vadd.f32 %v1639_v48, %v1625_v40 }
 0x545   :  { %v2123_v43 = vld [vmem:[#allocation3 + $0x30] sm:$0xff] }
 0x546   :  { %v2529_v47 = vmul.f32 -1.442695, %v1631_v41  ;;  %v2530_v50 = vmul.f32 -1.442695, %v1640_v49 }
 0x548   :  { %3249 = vpow2.f32 %v2529_v47 }
 0x549   :  { %3251 = vpow2.f32 %v2530_v50 }
 0x54b   :  { %v1715_v51 = vpop.f32.mrb[28].mxu0 }
 0x54c   :  { %v2931_v52 = vpop.f32.mrb[29].mxu0  ;;  %v1716_v58 = vadd.f32 %v3721_v57, %v1715_v51 }
 0x552   :  { %v3250_v53 = vpop.eup %3249 }
 0x553   :  { %v1635_v54 = vadd.f32 1.0, %v3250_v53  ;;  %v3252_v55 = vpop.eup %3251 }
 0x554   :  { %v1644_v56 = vadd.f32 1.0, %v3252_v55  ;;  %v2132_v55 = vld [vmem:[#allocation4 + $0x30] sm:$0xff] }
 0x555   :  { %3253 = vrcp.f32 %v1635_v54 }
 0x556   :  { %3255 = vrcp.f32 %v1644_v56 }
 0x55f   :  { %v3254_v59 = vpop.eup %3253 }
 0x560   :  { %v1719_v60 = vmul.f32 %v3254_v59, %v1716_v58  ;;  %v3256_v63 = vpop.eup %3255 }
 0x561   :  { %v1722_v0 = vsub.f32 1.0, %v3256_v63  ;;  %v1724_v3 = vmul.f32 %v3256_v63, %v1483_v34  ;;  %v2114_v34 = vld [vmem:[#allocation2 + $0x30] sm:$0xff] }
 0x562   :  { %v1720_v62 = vadd.f32 %v1719_v60, %v1648_v61 }
 0x564   :  { %3257 = vtanh.f32 %v1720_v62 }
 0x56e   :  { %v3258_v1 = vpop.eup %3257 }
 0x56f   :  { %v1723_v2 = vmul.f32 %v3258_v1, %v1722_v0  ;;  %v2356_v1 = vld [vmem:[#allocation2 + $0x38] sm:$0xff] }
 0x571   :  { %v1725_v4 = vadd.f32 %v1724_v3, %v1723_v2 }
 0x573   :  { %2532 = vst.msk [vmem:[%s3922_s12 + $0x20] sm:$0xff] %vm116_vm0, %v1725_v4  ;;  %2941 = vmatmul.mubr.msk.f32.vlgmr.msra.gmra.mrb[24].mxu1 %vm116_vm0, %v1725_v4  ;;  %2952 = vmatmul.mubr.msk.f32.vlgmr.msra.gmra.mrb[30].mxu0 %vm116_vm0, %v1725_v4 }
 0x574   :  { %3159 = vmatpush3.bf16.msra.mxu1 %v3642_v42  ;;  %2962 = vmatprep.mubr.msk.f32.mxu1 %vm3414_vm1, %v3415_v37 }
 0x575   :  { %3160 = vmatprep.subr.bf16.mxu1 %v3413_v22  ;;  %3165 = vmatpush3.bf16.msra.mxu0 %v3586_v19 }
 0x576   :  { %3166 = vmatprep.subr.bf16.mxu0 %v3413_v22  ;;  %2973 = vmatprep.mubr.msk.f32.mxu0 %vm3414_vm1, %v3415_v37 }
 0x578   :  { %3162 = vmatpush3.bf16.msra.mxu1 %v3655_v46 }
 0x579   :  { %3169 = vmatprep.subr.bf16.mxu1 %v3413_v22  ;;  %3168 = vmatpush3.bf16.msra.mxu0 %v3604_v28 }
 0x57a   :  { %3175 = vmatprep.subr.bf16.mxu0 %v3413_v22 }
 0x57b   :  { %2963 = vmatmul.mubr.msk.f32.vlgmr.msra.gmra.mrb[26].mxu1 %vm116_vm0, %v1725_v4 }
 0x57c   :  { %3171 = vmatpush3.bf16.msra.mxu1 %v3637_v39  ;;  %2984 = vmatprep.mubr.msk.f32.mxu1 %vm3414_vm1, %v3415_v37 }
 0x57d   :  { %3172 = vmatprep.subr.bf16.mxu1 %v3413_v22 }
 0x580   :  { %3174 = vmatpush3.bf16.msra.mxu1 %v3647_v45 }
 0x581   :  { %3181 = vmatprep.subr.bf16.mxu1 %v3413_v22 }
 0x646   :  { %v1797_v5 = vpop.f32.mrb[24].mxu1  ;;  %v1867_v38 = vpop.f32.mrb[30].mxu0 }
 0x647   :  { %v1873_v7 = vadd.f32 %v1872_v6, %v1797_v5  ;;  %v2942_v8 = vpop.f32.mrb[25].mxu1  ;;  %v2953_v9 = vpop.f32.mrb[31].mxu0  ;;  %v1882_v12 = vadd.f32 %v1881_v11, %v1867_v38  ;;  %v2365_v38 = vld [vmem:[#allocation3 + $0x38] sm:$0xff] }
 0x649   :  { %v2535_v10 = vmul.f32 -1.442695, %v1873_v7  ;;  %v2536_v13 = vmul.f32 -1.442695, %v1882_v12 }
 0x64b   :  { %3259 = vpow2.f32 %v2535_v10 }
 0x64c   :  { %3261 = vpow2.f32 %v2536_v13 }
 0x64e   :  { %v1957_v14 = vpop.f32.mrb[26].mxu1 }
 0x64f   :  { %v2964_v15 = vpop.f32.mrb[27].mxu1  ;;  %v1958_v21 = vadd.f32 %v3721_v57, %v1957_v14  ;;  %v2374_v14 = vld [vmem:[#allocation4 + $0x38] sm:$0xff] }
 0x655   :  { %v3260_v16 = vpop.eup %3259 }
 0x656   :  { %v1877_v17 = vadd.f32 1.0, %v3260_v16  ;;  %v3262_v18 = vpop.eup %3261 }
 0x657   :  { %v1886_v20 = vadd.f32 1.0, %v3262_v18 }
 0x658   :  { %3263 = vrcp.f32 %v1877_v17 }
 0x659   :  { %3265 = vrcp.f32 %v1886_v20 }
 0x662   :  { %v3264_v23 = vpop.eup %3263 }
 0x663   :  { %v1961_v24 = vmul.f32 %v3264_v23, %v1958_v21  ;;  %v3266_v27 = vpop.eup %3265 }
 0x664   :  { %v1964_v29 = vsub.f32 1.0, %v3266_v27  ;;  %v1966_v32 = vmul.f32 %v3266_v27, %v1725_v4 }
 0x665   :  { %v1962_v26 = vadd.f32 %v1961_v24, %v1890_v25 }
 0x667   :  { %3267 = vtanh.f32 %v1962_v26 }
 0x671   :  { %v3268_v30 = vpop.eup %3267 }
 0x672   :  { %v1965_v31 = vmul.f32 %v3268_v30, %v1964_v29 }
 0x674   :  { %v1967_v33 = vadd.f32 %v1966_v32, %v1965_v31 }
 0x676   :  { %2538 = vst.msk [vmem:[%s3922_s12 + $0x28] sm:$0xff] %vm116_vm0, %v1967_v33  ;;  %2974 = vmatmul.mubr.msk.f32.vlgmr.msra.gmra.mrb[32].mxu0 %vm116_vm0, %v1967_v33  ;;  %2985 = vmatmul.mubr.msk.f32.vlgmr.msra.gmra.mrb[28].mxu1 %vm116_vm0, %v1967_v33 }
 0x677   :  { %3177 = vmatpush3.bf16.msra.mxu0 %v3642_v42  ;;  %2995 = vmatprep.mubr.msk.f32.mxu0 %vm3414_vm1, %v3415_v37 }
 0x678   :  { %3178 = vmatprep.subr.bf16.mxu0 %v3413_v22  ;;  %3183 = vmatpush3.bf16.msra.mxu1 %v3586_v19 }
 0x679   :  { %3184 = vmatprep.subr.bf16.mxu1 %v3413_v22  ;;  %3006 = vmatprep.mubr.msk.f32.mxu1 %vm3414_vm1, %v3415_v37 }
 0x67b   :  { %3180 = vmatpush3.bf16.msra.mxu0 %v3655_v46 }
 0x67c   :  { %3187 = vmatprep.subr.bf16.mxu0 %v3413_v22  ;;  %3186 = vmatpush3.bf16.msra.mxu1 %v3604_v28 }
 0x67d   :  { %3193 = vmatprep.subr.bf16.mxu1 %v3413_v22 }
 0x67e   :  { %2996 = vmatmul.mubr.msk.f32.vlgmr.msra.gmra.mrb[34].mxu0 %vm116_vm0, %v1967_v33 }
 0x67f   :  { %3189 = vmatpush3.bf16.msra.mxu0 %v3637_v39  ;;  %3017 = vmatprep.mubr.msk.f32.mxu0 %vm3414_vm1, %v3415_v37 }
 0x680   :  { %3190 = vmatprep.subr.bf16.mxu0 %v3413_v22 }
 0x683   :  { %3192 = vmatpush3.bf16.msra.mxu0 %v3647_v45 }
 0x749   :  { %v2039_v19 = vpop.f32.mrb[32].mxu0  ;;  %v2109_v35 = vpop.f32.mrb[28].mxu1 }
 0x74a   :  { %v2115_v36 = vadd.f32 %v2114_v34, %v2039_v19  ;;  %v2975_v40 = vpop.f32.mrb[33].mxu0  ;;  %v2986_v41 = vpop.f32.mrb[29].mxu1  ;;  %v2124_v44 = vadd.f32 %v2123_v43, %v2109_v35 }
 0x74c   :  { %v2541_v28 = vmul.f32 -1.442695, %v2115_v36  ;;  %v2542_v47 = vmul.f32 -1.442695, %v2124_v44 }
 0x74e   :  { %3269 = vpow2.f32 %v2541_v28 }
 0x74f   :  { %3271 = vpow2.f32 %v2542_v47 }
 0x751   :  { %v2199_v48 = vpop.f32.mrb[34].mxu0 }
 0x752   :  { %v2997_v39 = vpop.f32.mrb[35].mxu0  ;;  %v2200_v45 = vadd.f32 %v3721_v57, %v2199_v48 }
 0x758   :  { %v3270_v49 = vpop.eup %3269 }
 0x759   :  { %v2119_v50 = vadd.f32 1.0, %v3270_v49  ;;  %v3272_v51 = vpop.eup %3271 }
 0x75a   :  { %v2128_v52 = vadd.f32 1.0, %v3272_v51 }
 0x75b   :  { %3273 = vrcp.f32 %v2119_v50 }
 0x75c   :  { %3275 = vrcp.f32 %v2128_v52 }
 0x765   :  { %v3274_v53 = vpop.eup %3273 }
 0x766   :  { %v2203_v54 = vmul.f32 %v3274_v53, %v2200_v45  ;;  %v3276_v58 = vpop.eup %3275 }
 0x767   :  { %v2206_v59 = vsub.f32 1.0, %v3276_v58  ;;  %v2208_v62 = vmul.f32 %v3276_v58, %v1967_v33 }
 0x768   :  { %v2204_v56 = vadd.f32 %v2203_v54, %v2132_v55 }
 0x76a   :  { %3277 = vtanh.f32 %v2204_v56 }
 0x774   :  { %v3278_v60 = vpop.eup %3277 }
 0x775   :  { %v2207_v61 = vmul.f32 %v3278_v60, %v2206_v59 }
 0x777   :  { %v2209_v63 = vadd.f32 %v2208_v62, %v2207_v61 }
 0x779   :  { %2544 = vst.msk [vmem:[%s3922_s12 + $0x30] sm:$0xff] %vm116_vm0, %v2209_v63  ;;  %3007 = vmatmul.mubr.msk.f32.vlgmr.msra.gmra.mrb[30].mxu1 %vm116_vm0, %v2209_v63  ;;  %3018 = vmatmul.mubr.msk.f32.vlgmr.msra.gmra.mrb[36].mxu0 %vm116_vm0, %v2209_v63 }
 0x77a   :  { %3195 = vmatpush3.bf16.msra.mxu1 %v3642_v42  ;;  %3028 = vmatprep.mubr.msk.f32.mxu1 %vm3414_vm1, %v3415_v37 }
 0x77b   :  { %3196 = vmatprep.subr.bf16.mxu1 %v3413_v22 }
 0x77e   :  { %3198 = vmatpush3.bf16.msra.mxu1 %v3655_v46 }
 0x781   :  { %3029 = vmatmul.mubr.msk.f32.vlgmr.msra.gmra.mrb[32].mxu1 %vm116_vm0, %v2209_v63 }
 0x84c   :  { %v2281_v0 = vpop.f32.mrb[30].mxu1  ;;  %v2351_v2 = vpop.f32.mrb[36].mxu0 }
 0x84d   :  { %v2357_v3 = vadd.f32 %v2356_v1, %v2281_v0  ;;  %v3008_v4 = vpop.f32.mrb[31].mxu1  ;;  %v3019_v5 = vpop.f32.mrb[37].mxu0  ;;  %v2366_v7 = vadd.f32 %v2365_v38, %v2351_v2 }
 0x84f   :  { %v2547_v6 = vmul.f32 -1.442695, %v2357_v3  ;;  %v2548_v42 = vmul.f32 -1.442695, %v2366_v7 }
 0x851   :  { %3279 = vpow2.f32 %v2547_v6 }
 0x852   :  { %3281 = vpow2.f32 %v2548_v42 }
 0x854   :  { %v2441_v8 = vpop.f32.mrb[32].mxu1 }
 0x855   :  { %v3030_v9 = vpop.f32.mrb[33].mxu1  ;;  %v2442_v11 = vadd.f32 %v3721_v57, %v2441_v8 }
 0x85b   :  { %v3280_v37 = vpop.eup %3279 }
 0x85c   :  { %v2361_v22 = vadd.f32 1.0, %v3280_v37  ;;  %v3282_v46 = vpop.eup %3281 }
 0x85d   :  { %v2370_v10 = vadd.f32 1.0, %v3282_v46 }
 0x85e   :  { %3283 = vrcp.f32 %v2361_v22 }
 0x85f   :  { %3285 = vrcp.f32 %v2370_v10 }
 0x868   :  { %v3284_v12 = vpop.eup %3283 }
 0x869   :  { %v2445_v13 = vmul.f32 %v3284_v12, %v2442_v11  ;;  %v3286_v16 = vpop.eup %3285 }
 0x86a   :  { %v2448_v17 = vsub.f32 1.0, %v3286_v16  ;;  %v2450_v21 = vmul.f32 %v3286_v16, %v2209_v63 }
 0x86b   :  { %v2446_v15 = vadd.f32 %v2445_v13, %v2374_v14 }
 0x86d   :  { %3287 = vtanh.f32 %v2446_v15 }
 0x877   :  { %v3288_v18 = vpop.eup %3287 }
 0x878   :  { %v2449_v20 = vmul.f32 %v3288_v18, %v2448_v17 }
 0x87a   :  { %v2451_v23 = vadd.f32 %v2450_v21, %v2449_v20 }
 0x87c   :  { %2550 = vst.msk [vmem:[%s3922_s12 + $0x38] sm:$0xff] %vm116_vm0, %v2451_v23  ;;  %2454 = vst.msk [vmem:[#allocation13] sm:$0xff] %vm116_vm0, %v2451_v23 }
 0x87d   :  { %3388 = shalt.err (!%p3385_p8)
}
 0x87e   :  { %s3389_s0 = scalar_lea.hbm %s3923_s13, 128 }
 0x87f   :  { %p3390_p9 = scmp.ne.s32.totalorder %s3923_s13, %s3389_s0  ;;  %p3393_p10 = scmp.lt.u32.totalorder %s3389_s0, %s3923_s13 }
 0x881   :  { %p3395_p11 = pnand %p3393_p10, %p3390_p9 }
 0x883   :  { %3398 = shalt.err (!%p3395_p11)
}
 0x884   :  { %2466 = dma.vmem_to_hbm [thread:$0]  %s2464_s15, 128, %s3923_s13, [#allocation7]  }
 0x885   :  { %3405 = dma.done.wait [#allocation7], 128  }
 0x886   :  { %3406 = vsyncadd [#allocation7], 4294967168 }
 0x887   :  { %2472 = vsyncpa [#allocation6], 1 }
 0x888   :  { %2473 = vsyncpa [#allocation9], 1 }
 0x889   :  { %2474 = vsyncpa [#allocation12], 1 }
 0x88a   :  { %2475 = vsyncpa [#allocation7], 1 }

</bundles_post_ra>
